<compile_context>
chip_gen: v7x
topology: tpu7x:2x2x1
jax: 0.10.0
libtpu: 0.0.40
codegen_flags: <defaults>
</compile_context>

<pallas_src>
import jax
import jax.numpy as jnp
from jax.experimental import pallas as pl
from jax.experimental.pallas import tpu as pltpu


# ----------------------------------------------------------------------------
# Config (mirrors the PyTorch DKN config)
# ----------------------------------------------------------------------------
class Config:
    num_words = 100
    num_entities = 50
    word_embedding_dim = 32
    entity_embedding_dim = 16
    num_words_title = 16
    num_filters = 8
    window_sizes = (2, 3)
    use_context = True
    use_attention = True


# ----------------------------------------------------------------------------
# Spec helper: whole-array blocks on a unit grid (everything fits VMEM here)
# ----------------------------------------------------------------------------
def _full_block_specs(args):
    return [pl.BlockSpec(a.shape, lambda i, nd=a.ndim: (0,) * nd) for a in args]


# ----------------------------------------------------------------------------
# Fused KCNN kernel: transform + conv (both windows) + ReLU + max-pool
# ----------------------------------------------------------------------------
def _make_kcnn_kernel(window_sizes, num_channels):
    n_w = len(window_sizes)
    n_extra = num_channels - 1            # entity (+ context) channels

    def kernel(*refs):
        word_ref = refs[0]                                  # [N, T, Dw] bf16
        extra_refs = refs[1:1 + n_extra]                    # [N, T, E]  bf16
        m_ref = refs[1 + n_extra]                           # [E, Dw]    bf16
        b_ref = refs[2 + n_extra]                           # [1, Dw]    f32
        conv_w_refs = refs[3 + n_extra:3 + n_extra + n_w]   # [w, C, Dw, F] bf16
        conv_b_refs = refs[3 + n_extra + n_w:3 + n_extra + 2 * n_w]  # [1, F] f32
        o_ref = refs[-1]                                    # [N, n_w*F] f32

        t_len = word_ref.shape[1]
        num_filters = conv_w_refs[0].shape[-1]
        m = m_ref[...]
        b = b_ref[...]

        def transform(x):
            # tanh(x @ M + b): project entity/context embeddings to word space.
            h = jnp.einsum('nte,ed->ntd', x, m,
                           preferred_element_type=jnp.float32) + b
            return jnp.tanh(h).astype(jnp.bfloat16)

        # Channel order matches the PyTorch KCNN stack: word, entity[, context].
        channels = [word_ref[...]] + [transform(r[...]) for r in extra_refs]

        # Conv as shifted matmuls (in-kernel im2col) + bias + ReLU + max-pool
        # over time, for every window size; results land in one lane-dense
        # [N, n_w*F] output slab (no downstream XLA concatenate).
        col = 0
        for wi, w in enumerate(window_sizes):
            t_out = t_len - w + 1
            acc = None
            for dw in range(w):
                y = None
                for c, xc in enumerate(channels):
                    slab = conv_w_refs[wi][dw, c, :, :]      # [Dw, F] bf16
                    yc = jnp.einsum('ntd,df->ntf', xc, slab,
                                    preferred_element_type=jnp.float32)
                    y = yc if y is None else y + yc
                part = y[:, dw:dw + t_out, :]                # shifted window
                acc = part if acc is None else acc + part
            acc = jnp.maximum(acc + conv_b_refs[wi][...], 0.0)
            o_ref[:, col:col + num_filters] = jnp.max(acc, axis=1)   # [N, F]
            col += num_filters

    return kernel


def kcnn_pallas(params, config, titles, entities):
    """Fused KCNN over a batch of N news items (candidate + history stacked).

    titles, entities: [N, T] int32.  Returns [N, len(window_sizes)*F] f32.
    """
    N, T = titles.shape
    F = config.num_filters
    bf16 = jnp.bfloat16

    # Embedding gathers stay in XLA (data-dependent gather glue).
    word_vec = jnp.take(params['word_emb'], titles, axis=0).astype(bf16)
    extra = [jnp.take(params['entity_emb'], entities, axis=0).astype(bf16)]
    if config.use_context:
        extra.append(jnp.take(params['context_emb'], entities, axis=0).astype(bf16))
    num_channels = 1 + len(extra)

    # Conv weights [F, C, w, Dw] -> [w, C, Dw, F]: a [Dw, F] slab per
    # (shift, channel) so the conv runs as shifted MXU matmuls in-kernel.
    conv_w = [jnp.transpose(params['conv_w'][w], (2, 1, 3, 0)).astype(bf16)
              for w in config.window_sizes]
    conv_b = [params['conv_b'][w] for w in config.window_sizes]

    args = ([word_vec] + extra
            + [params['transform_m'].astype(bf16), params['transform_b']]
            + conv_w + conv_b)
    out_dim = len(config.window_sizes) * F
    return pl.pallas_call(
        _make_kcnn_kernel(config.window_sizes, num_channels),
        out_shape=jax.ShapeDtypeStruct((N, out_dim), jnp.float32),
        grid=(1,),
        in_specs=_full_block_specs(args),
        out_specs=pl.BlockSpec((N, out_dim), lambda i: (0, 0)),
        compiler_params=pltpu.CompilerParams(dimension_semantics=("arbitrary",)),
    )(*args)


# ----------------------------------------------------------------------------
# Fused attention + final DNN kernel
# ----------------------------------------------------------------------------
def _attention_dnn_kernel(cand_ref, hist_ref,
                          aw1c_ref, aw1h_ref, ab1_ref, aw2_ref, ab2_ref,
                          dw1u_ref, dw1c_ref, db1_ref, dw2_ref, db2_ref,
                          o_ref):
    cand = cand_ref[...]                                   # [B, D]    f32
    hist = hist_ref[...]                                   # [B, H, D] f32
    cand_b = cand.astype(jnp.bfloat16)
    hist_b = hist.astype(jnp.bfloat16)

    # Attention DNN on cat([candidate_expanded, clicked], -1); W1 is pre-split
    # row-wise in the wrapper so no in-kernel concatenate is needed.
    cand_part = jnp.dot(cand_b, aw1c_ref[...],
                        preferred_element_type=jnp.float32)            # [B, 16]
    hist_part = jnp.einsum('bhd,df->bhf', hist_b, aw1h_ref[...],
                           preferred_element_type=jnp.float32)         # [B, H, 16]
    h1 = jnp.maximum(hist_part + cand_part[:, None, :] + ab1_ref[...], 0.0)

    # Second attention layer as a VPU multiply + lane reduction (avoids a
    # degenerate N=1 matmul), then softmax over the history axis.
    scores = jnp.sum(h1 * aw2_ref[...], axis=-1, keepdims=True) + ab2_ref[...]
    mx = jnp.max(scores, axis=1, keepdims=True)
    e = jnp.exp(scores - mx)
    attn = e / jnp.sum(e, axis=1, keepdims=True)           # [B, H, 1]
    user = jnp.sum(attn * hist, axis=1)                    # [B, D]

    # Final DNN on cat([user, candidate], -1): Linear -> ReLU -> Linear -> Sigmoid.
    d1 = jnp.maximum(
        jnp.dot(user.astype(jnp.bfloat16), dw1u_ref[...],
                preferred_element_type=jnp.float32)
        + jnp.dot(cand_b, dw1c_ref[...], preferred_element_type=jnp.float32)
        + db1_ref[...], 0.0)                               # [B, 16]
    logits = jnp.dot(d1.astype(jnp.bfloat16), dw2_ref[...],
                     preferred_element_type=jnp.float32) + db2_ref[...]  # [B, 1]
    o_ref[...] = jax.nn.sigmoid(logits)


def attention_dnn_pallas(cand, hist, params):
    # NOTE: full-array blocks on a unit grid are fine at these sizes (a few
    # KiB); for production B/H this should be tiled over B with a "parallel"
    # grid axis (VMEM budget hits first on v7x's 64 MiB).
    B, D = cand.shape
    bf16 = jnp.bfloat16
    args = (cand, hist,
            params['attn_w1'][:D].astype(bf16),    # rows multiplying candidate
            params['attn_w1'][D:].astype(bf16),    # rows multiplying clicked
            params['attn_b1'],
            params['attn_w2'].reshape(1, 1, -1),
            params['attn_b2'].reshape(1, 1, 1),
            params['dnn_w1'][:D].astype(bf16),     # rows multiplying user
            params['dnn_w1'][D:].astype(bf16),     # rows multiplying candidate
            params['dnn_b1'],
            params['dnn_w2'].astype(bf16),
            params['dnn_b2'])
    return pl.pallas_call(
        _attention_dnn_kernel,
        out_shape=jax.ShapeDtypeStruct((B, 1), jnp.float32),
        grid=(1,),
        in_specs=_full_block_specs(args),
        out_specs=pl.BlockSpec((B, 1), lambda i: (0, 0)),
        compiler_params=pltpu.CompilerParams(dimension_semantics=("arbitrary",)),
    )(*args)


# ----------------------------------------------------------------------------
# DKN forward
# ----------------------------------------------------------------------------
def dkn_forward(params, config, candidate_news, history):
    B = candidate_news['title'].shape[0]
    H = len(history)

    # Batch the candidate and all H history items into ONE fused KCNN call
    # (the per-item loop in the reference module is pure dispatch overhead).
    all_news = [candidate_news] + list(history)
    titles = jnp.concatenate([n['title'] for n in all_news], axis=0)
    ents = jnp.concatenate([n['title_entities'] for n in all_news], axis=0)
    vecs = kcnn_pallas(params, config, titles, ents)       # [(H+1)*B, D]

    candidate_news_vector = vecs[:B]                       # [B, D]
    history_vector = vecs[B:].reshape(H, B, -1)            # [H, B, D] (stack order)
    if config.use_attention:
        hist_bhd = jnp.transpose(history_vector, (1, 0, 2))   # [B, H, D]
        p = attention_dnn_pallas(candidate_news_vector, hist_bhd, params)
    else:
        # TODO(synk): non-attention branch (history mean -> DNN) not wired
        # through Pallas; this script fixes config.use_attention = True.
        raise NotImplementedError
    return p[:, 0]                                         # squeeze(dim=1) -> [B]


# ----------------------------------------------------------------------------
# Deterministic parameter init
# ----------------------------------------------------------------------------
def init_params(config, key):
    ks = jax.random.split(key, 16)
    Dw, E, F = (config.word_embedding_dim, config.entity_embedding_dim,
                config.num_filters)
    C = 3 if config.use_context else 2
    D = len(config.window_sizes) * F

    def rnd(k, shape, scale=0.1):
        return scale * jax.random.normal(k, shape, dtype=jnp.float32)

    word_emb = rnd(ks[0], (config.num_words, Dw)).at[0].set(0.0)  # padding_idx=0
    params = {
        'word_emb': word_emb,
        'entity_emb': rnd(ks[1], (config.num_entities, E)),
        'context_emb': rnd(ks[2], (config.num_entities, E)),
        'transform_m': rnd(ks[3], (E, Dw)),
        'transform_b': rnd(ks[4], (1, Dw)),
        'attn_w1': rnd(ks[5], (2 * D, 16)),
        'attn_b1': rnd(ks[6], (1, 16)),
        'attn_w2': rnd(ks[7], (16, 1)),
        'attn_b2': rnd(ks[8], (1, 1)),
        'dnn_w1': rnd(ks[9], (2 * D, 16)),
        'dnn_b1': rnd(ks[10], (1, 16)),
        'dnn_w2': rnd(ks[11], (16, 1)),
        'dnn_b2': rnd(ks[12], (1, 1)),
        'conv_w': {},
        'conv_b': {},
    }
    ck = jax.random.split(ks[13], 2 * len(config.window_sizes))
    for idx, w in enumerate(config.window_sizes):
        params['conv_w'][w] = rnd(ck[2 * idx], (F, C, w, Dw))
        params['conv_b'][w] = rnd(ck[2 * idx + 1], (1, F))
    return params


# ----------------------------------------------------------------------------
# Main
# ----------------------------------------------------------------------------
if __name__ == "__main__":
    config = Config()
    key = jax.random.PRNGKey(0)
    kp, kd = jax.random.split(key)
    params = init_params(config, kp)

    B, T, H = 2, config.num_words_title, 3
    kk = jax.random.split(kd, 2 * (H + 1))

    def make_news(k1, k2):
        return {
            'title': jax.random.randint(k1, (B, T), 0, config.num_words,
                                        dtype=jnp.int32),
            'title_entities': jax.random.randint(k2, (B, T), 0,
                                                 config.num_entities,
                                                 dtype=jnp.int32),
        }

    candidate_news = make_news(kk[0], kk[1])
    history = [make_news(kk[2 + 2 * i], kk[3 + 2 * i]) for i in range(H)]

    p = dkn_forward(params, config, candidate_news, history)
    p = jax.block_until_ready(p)
    assert p.shape == (B,)
    assert bool(jnp.all((p >= 0.0) & (p <= 1.0)))
    print("KERNEL_OK")
</pallas_src>

<mosaic_0001>
module attributes {stable_mosaic.version = 11 : i64} {
  func.func @kernel(%arg0: i32, %arg1: memref<8x16x32xbf16, #tpu.memory_space<vmem>>, %arg2: memref<8x16x16xbf16, #tpu.memory_space<vmem>>, %arg3: memref<8x16x16xbf16, #tpu.memory_space<vmem>>, %arg4: memref<16x32xbf16, #tpu.memory_space<vmem>>, %arg5: memref<1x32xf32, #tpu.memory_space<vmem>>, %arg6: memref<2x3x32x8xbf16, #tpu.memory_space<vmem>>, %arg7: memref<3x3x32x8xbf16, #tpu.memory_space<vmem>>, %arg8: memref<1x8xf32, #tpu.memory_space<vmem>>, %arg9: memref<1x8xf32, #tpu.memory_space<vmem>>, %arg10: memref<8x16xf32, #tpu.memory_space<vmem>>) attributes {dimension_semantics = [#tpu.dimension_semantics<arbitrary>], iteration_bounds = array<i64: 1>, scalar_prefetch = 0 : i64, scratch_operands = 0 : i64, tpu.core_type = #tpu.core_type<tc>, window_params = [{pipeline_mode = #tpu.pipeline_mode<synchronous>, transform_indices = @transform_0, window_bounds = array<i64: 8, 16, 32>}, {pipeline_mode = #tpu.pipeline_mode<synchronous>, transform_indices = @transform_1, window_bounds = array<i64: 8, 16, 16>}, {pipeline_mode = #tpu.pipeline_mode<synchronous>, transform_indices = @transform_2, window_bounds = array<i64: 8, 16, 16>}, {pipeline_mode = #tpu.pipeline_mode<synchronous>, transform_indices = @transform_3, window_bounds = array<i64: 16, 32>}, {pipeline_mode = #tpu.pipeline_mode<synchronous>, transform_indices = @transform_4, window_bounds = array<i64: 1, 32>}, {pipeline_mode = #tpu.pipeline_mode<synchronous>, transform_indices = @transform_5, window_bounds = array<i64: 2, 3, 32, 8>}, {pipeline_mode = #tpu.pipeline_mode<synchronous>, transform_indices = @transform_6, window_bounds = array<i64: 3, 3, 32, 8>}, {pipeline_mode = #tpu.pipeline_mode<synchronous>, transform_indices = @transform_7, window_bounds = array<i64: 1, 8>}, {pipeline_mode = #tpu.pipeline_mode<synchronous>, transform_indices = @transform_8, window_bounds = array<i64: 1, 8>}, {pipeline_mode = #tpu.pipeline_mode<synchronous>, transform_indices = @transform_9, window_bounds = array<i64: 8, 16>}]} {
    %c0 = arith.constant 0 : index
    %c0_0 = arith.constant 0 : index
    %0 = vector.load %arg4[%c0, %c0_0] : memref<16x32xbf16, #tpu.memory_space<vmem>>, vector<16x32xbf16>
    %c0_1 = arith.constant 0 : index
    %c0_2 = arith.constant 0 : index
    %1 = vector.load %arg5[%c0_1, %c0_2] : memref<1x32xf32, #tpu.memory_space<vmem>>, vector<1x32xf32>
    %c0_3 = arith.constant 0 : index
    %c0_4 = arith.constant 0 : index
    %c0_5 = arith.constant 0 : index
    %2 = vector.load %arg1[%c0_3, %c0_4, %c0_5] : memref<8x16x32xbf16, #tpu.memory_space<vmem>>, vector<8x16x32xbf16>
    %c0_6 = arith.constant 0 : index
    %c0_7 = arith.constant 0 : index
    %c0_8 = arith.constant 0 : index
    %3 = vector.load %arg2[%c0_6, %c0_7, %c0_8] : memref<8x16x16xbf16, #tpu.memory_space<vmem>>, vector<8x16x16xbf16>
    "tpu.trace_start"() <{level = 10 : i32, message = "nte,ed->ntd"}> : () -> ()
    %cst = arith.constant dense<0.000000e+00> : vector<8x16x32xf32>
    %4 = tpu.matmul %3, %0, %cst {dimension_numbers = #tpu.dot_dimension_numbers<[2], [0], [0, 1], [1], [0, 0, 0, 1, 1, 1], [], []>} : vector<8x16x16xbf16>, vector<16x32xbf16>, vector<8x16x32xf32> -> vector<8x16x32xf32>
    "tpu.trace_stop"() : () -> ()
    %5 = vector.shape_cast %1 : vector<1x32xf32> to vector<1x1x32xf32>
    %6 = vector.broadcast %5 : vector<1x1x32xf32> to vector<8x16x32xf32>
    %7 = arith.addf %4, %6 : vector<8x16x32xf32>
    %8 = math.tanh %7 : vector<8x16x32xf32>
    %9 = arith.truncf %8 : vector<8x16x32xf32> to vector<8x16x32xbf16>
    %c0_9 = arith.constant 0 : index
    %c0_10 = arith.constant 0 : index
    %c0_11 = arith.constant 0 : index
    %10 = vector.load %arg3[%c0_9, %c0_10, %c0_11] : memref<8x16x16xbf16, #tpu.memory_space<vmem>>, vector<8x16x16xbf16>
    "tpu.trace_start"() <{level = 10 : i32, message = "nte,ed->ntd"}> : () -> ()
    %cst_12 = arith.constant dense<0.000000e+00> : vector<8x16x32xf32>
    %11 = tpu.matmul %10, %0, %cst_12 {dimension_numbers = #tpu.dot_dimension_numbers<[2], [0], [0, 1], [1], [0, 0, 0, 1, 1, 1], [], []>} : vector<8x16x16xbf16>, vector<16x32xbf16>, vector<8x16x32xf32> -> vector<8x16x32xf32>
    "tpu.trace_stop"() : () -> ()
    %12 = vector.shape_cast %1 : vector<1x32xf32> to vector<1x1x32xf32>
    %13 = vector.broadcast %12 : vector<1x1x32xf32> to vector<8x16x32xf32>
    %14 = arith.addf %11, %13 : vector<8x16x32xf32>
    %15 = math.tanh %14 : vector<8x16x32xf32>
    %16 = arith.truncf %15 : vector<8x16x32xf32> to vector<8x16x32xbf16>
    %c0_13 = arith.constant 0 : index
    %c0_14 = arith.constant 0 : index
    %c0_15 = arith.constant 0 : index
    %c0_16 = arith.constant 0 : index
    %17 = vector.load %arg6[%c0_13, %c0_14, %c0_15, %c0_16] : memref<2x3x32x8xbf16, #tpu.memory_space<vmem>>, vector<1x1x32x8xbf16>
    %18 = vector.shape_cast %17 : vector<1x1x32x8xbf16> to vector<32x8xbf16>
    "tpu.trace_start"() <{level = 10 : i32, message = "ntd,df->ntf"}> : () -> ()
    %cst_17 = arith.constant dense<0.000000e+00> : vector<8x16x8xf32>
    %19 = tpu.matmul %2, %18, %cst_17 {dimension_numbers = #tpu.dot_dimension_numbers<[2], [0], [0, 1], [1], [0, 0, 0, 1, 1, 1], [], []>} : vector<8x16x32xbf16>, vector<32x8xbf16>, vector<8x16x8xf32> -> vector<8x16x8xf32>
    "tpu.trace_stop"() : () -> ()
    %c0_18 = arith.constant 0 : index
    %c1 = arith.constant 1 : index
    %c0_19 = arith.constant 0 : index
    %c0_20 = arith.constant 0 : index
    %20 = vector.load %arg6[%c0_18, %c1, %c0_19, %c0_20] : memref<2x3x32x8xbf16, #tpu.memory_space<vmem>>, vector<1x1x32x8xbf16>
    %21 = vector.shape_cast %20 : vector<1x1x32x8xbf16> to vector<32x8xbf16>
    "tpu.trace_start"() <{level = 10 : i32, message = "ntd,df->ntf"}> : () -> ()
    %cst_21 = arith.constant dense<0.000000e+00> : vector<8x16x8xf32>
    %22 = tpu.matmul %9, %21, %cst_21 {dimension_numbers = #tpu.dot_dimension_numbers<[2], [0], [0, 1], [1], [0, 0, 0, 1, 1, 1], [], []>} : vector<8x16x32xbf16>, vector<32x8xbf16>, vector<8x16x8xf32> -> vector<8x16x8xf32>
    "tpu.trace_stop"() : () -> ()
    %23 = arith.addf %19, %22 : vector<8x16x8xf32>
    %c0_22 = arith.constant 0 : index
    %c2 = arith.constant 2 : index
    %c0_23 = arith.constant 0 : index
    %c0_24 = arith.constant 0 : index
    %24 = vector.load %arg6[%c0_22, %c2, %c0_23, %c0_24] : memref<2x3x32x8xbf16, #tpu.memory_space<vmem>>, vector<1x1x32x8xbf16>
    %25 = vector.shape_cast %24 : vector<1x1x32x8xbf16> to vector<32x8xbf16>
    "tpu.trace_start"() <{level = 10 : i32, message = "ntd,df->ntf"}> : () -> ()
    %cst_25 = arith.constant dense<0.000000e+00> : vector<8x16x8xf32>
    %26 = tpu.matmul %16, %25, %cst_25 {dimension_numbers = #tpu.dot_dimension_numbers<[2], [0], [0, 1], [1], [0, 0, 0, 1, 1, 1], [], []>} : vector<8x16x32xbf16>, vector<32x8xbf16>, vector<8x16x8xf32> -> vector<8x16x8xf32>
    "tpu.trace_stop"() : () -> ()
    %27 = arith.addf %23, %26 : vector<8x16x8xf32>
    %28 = vector.extract_strided_slice %27 {offsets = [0, 0, 0], sizes = [8, 15, 8], strides = [1, 1, 1]} : vector<8x16x8xf32> to vector<8x15x8xf32>
    %c1_26 = arith.constant 1 : index
    %c0_27 = arith.constant 0 : index
    %c0_28 = arith.constant 0 : index
    %c0_29 = arith.constant 0 : index
    %29 = vector.load %arg6[%c1_26, %c0_27, %c0_28, %c0_29] : memref<2x3x32x8xbf16, #tpu.memory_space<vmem>>, vector<1x1x32x8xbf16>
    %30 = vector.shape_cast %29 : vector<1x1x32x8xbf16> to vector<32x8xbf16>
    "tpu.trace_start"() <{level = 10 : i32, message = "ntd,df->ntf"}> : () -> ()
    %cst_30 = arith.constant dense<0.000000e+00> : vector<8x16x8xf32>
    %31 = tpu.matmul %2, %30, %cst_30 {dimension_numbers = #tpu.dot_dimension_numbers<[2], [0], [0, 1], [1], [0, 0, 0, 1, 1, 1], [], []>} : vector<8x16x32xbf16>, vector<32x8xbf16>, vector<8x16x8xf32> -> vector<8x16x8xf32>
    "tpu.trace_stop"() : () -> ()
    %c1_31 = arith.constant 1 : index
    %c1_32 = arith.constant 1 : index
    %c0_33 = arith.constant 0 : index
    %c0_34 = arith.constant 0 : index
    %32 = vector.load %arg6[%c1_31, %c1_32, %c0_33, %c0_34] : memref<2x3x32x8xbf16, #tpu.memory_space<vmem>>, vector<1x1x32x8xbf16>
    %33 = vector.shape_cast %32 : vector<1x1x32x8xbf16> to vector<32x8xbf16>
    "tpu.trace_start"() <{level = 10 : i32, message = "ntd,df->ntf"}> : () -> ()
    %cst_35 = arith.constant dense<0.000000e+00> : vector<8x16x8xf32>
    %34 = tpu.matmul %9, %33, %cst_35 {dimension_numbers = #tpu.dot_dimension_numbers<[2], [0], [0, 1], [1], [0, 0, 0, 1, 1, 1], [], []>} : vector<8x16x32xbf16>, vector<32x8xbf16>, vector<8x16x8xf32> -> vector<8x16x8xf32>
    "tpu.trace_stop"() : () -> ()
    %35 = arith.addf %31, %34 : vector<8x16x8xf32>
    %c1_36 = arith.constant 1 : index
    %c2_37 = arith.constant 2 : index
    %c0_38 = arith.constant 0 : index
    %c0_39 = arith.constant 0 : index
    %36 = vector.load %arg6[%c1_36, %c2_37, %c0_38, %c0_39] : memref<2x3x32x8xbf16, #tpu.memory_space<vmem>>, vector<1x1x32x8xbf16>
    %37 = vector.shape_cast %36 : vector<1x1x32x8xbf16> to vector<32x8xbf16>
    "tpu.trace_start"() <{level = 10 : i32, message = "ntd,df->ntf"}> : () -> ()
    %cst_40 = arith.constant dense<0.000000e+00> : vector<8x16x8xf32>
    %38 = tpu.matmul %16, %37, %cst_40 {dimension_numbers = #tpu.dot_dimension_numbers<[2], [0], [0, 1], [1], [0, 0, 0, 1, 1, 1], [], []>} : vector<8x16x32xbf16>, vector<32x8xbf16>, vector<8x16x8xf32> -> vector<8x16x8xf32>
    "tpu.trace_stop"() : () -> ()
    %39 = arith.addf %35, %38 : vector<8x16x8xf32>
    %40 = vector.extract_strided_slice %39 {offsets = [0, 1, 0], sizes = [8, 15, 8], strides = [1, 1, 1]} : vector<8x16x8xf32> to vector<8x15x8xf32>
    %41 = arith.addf %28, %40 : vector<8x15x8xf32>
    %c0_41 = arith.constant 0 : index
    %c0_42 = arith.constant 0 : index
    %42 = vector.load %arg8[%c0_41, %c0_42] : memref<1x8xf32, #tpu.memory_space<vmem>>, vector<1x8xf32>
    %43 = vector.shape_cast %42 : vector<1x8xf32> to vector<1x1x8xf32>
    %44 = vector.broadcast %43 : vector<1x1x8xf32> to vector<8x15x8xf32>
    %45 = arith.addf %41, %44 : vector<8x15x8xf32>
    %cst_43 = arith.constant 0.000000e+00 : f32
    %46 = vector.broadcast %cst_43 : f32 to vector<8x15x8xf32>
    %47 = arith.maximumf %45, %46 : vector<8x15x8xf32>
    %cst_44 = arith.constant dense<0xFF800000> : vector<8x8xf32>
    %48 = vector.multi_reduction <maximumf>, %47, %cst_44 [1] : vector<8x15x8xf32> to vector<8x8xf32>
    %c0_45 = arith.constant 0 : index
    %c0_46 = arith.constant 0 : index
    %49 = vector.load %arg10[%c0_45, %c0_46] : memref<8x16xf32, #tpu.memory_space<vmem>>, vector<8x8xf32>
    tpu.vector_store %arg10[%c0_45, %c0_46], %48 {strides = array<i32>} : memref<8x16xf32, #tpu.memory_space<vmem>>, vector<8x8xf32>,
    %c0_47 = arith.constant 0 : index
    %c0_48 = arith.constant 0 : index
    %c0_49 = arith.constant 0 : index
    %c0_50 = arith.constant 0 : index
    %50 = vector.load %arg7[%c0_47, %c0_48, %c0_49, %c0_50] : memref<3x3x32x8xbf16, #tpu.memory_space<vmem>>, vector<1x1x32x8xbf16>
    %51 = vector.shape_cast %50 : vector<1x1x32x8xbf16> to vector<32x8xbf16>
    "tpu.trace_start"() <{level = 10 : i32, message = "ntd,df->ntf"}> : () -> ()
    %cst_51 = arith.constant dense<0.000000e+00> : vector<8x16x8xf32>
    %52 = tpu.matmul %2, %51, %cst_51 {dimension_numbers = #tpu.dot_dimension_numbers<[2], [0], [0, 1], [1], [0, 0, 0, 1, 1, 1], [], []>} : vector<8x16x32xbf16>, vector<32x8xbf16>, vector<8x16x8xf32> -> vector<8x16x8xf32>
    "tpu.trace_stop"() : () -> ()
    %c0_52 = arith.constant 0 : index
    %c1_53 = arith.constant 1 : index
    %c0_54 = arith.constant 0 : index
    %c0_55 = arith.constant 0 : index
    %53 = vector.load %arg7[%c0_52, %c1_53, %c0_54, %c0_55] : memref<3x3x32x8xbf16, #tpu.memory_space<vmem>>, vector<1x1x32x8xbf16>
    %54 = vector.shape_cast %53 : vector<1x1x32x8xbf16> to vector<32x8xbf16>
    "tpu.trace_start"() <{level = 10 : i32, message = "ntd,df->ntf"}> : () -> ()
    %cst_56 = arith.constant dense<0.000000e+00> : vector<8x16x8xf32>
    %55 = tpu.matmul %9, %54, %cst_56 {dimension_numbers = #tpu.dot_dimension_numbers<[2], [0], [0, 1], [1], [0, 0, 0, 1, 1, 1], [], []>} : vector<8x16x32xbf16>, vector<32x8xbf16>, vector<8x16x8xf32> -> vector<8x16x8xf32>
    "tpu.trace_stop"() : () -> ()
    %56 = arith.addf %52, %55 : vector<8x16x8xf32>
    %c0_57 = arith.constant 0 : index
    %c2_58 = arith.constant 2 : index
    %c0_59 = arith.constant 0 : index
    %c0_60 = arith.constant 0 : index
    %57 = vector.load %arg7[%c0_57, %c2_58, %c0_59, %c0_60] : memref<3x3x32x8xbf16, #tpu.memory_space<vmem>>, vector<1x1x32x8xbf16>
    %58 = vector.shape_cast %57 : vector<1x1x32x8xbf16> to vector<32x8xbf16>
    "tpu.trace_start"() <{level = 10 : i32, message = "ntd,df->ntf"}> : () -> ()
    %cst_61 = arith.constant dense<0.000000e+00> : vector<8x16x8xf32>
    %59 = tpu.matmul %16, %58, %cst_61 {dimension_numbers = #tpu.dot_dimension_numbers<[2], [0], [0, 1], [1], [0, 0, 0, 1, 1, 1], [], []>} : vector<8x16x32xbf16>, vector<32x8xbf16>, vector<8x16x8xf32> -> vector<8x16x8xf32>
    "tpu.trace_stop"() : () -> ()
    %60 = arith.addf %56, %59 : vector<8x16x8xf32>
    %61 = vector.extract_strided_slice %60 {offsets = [0, 0, 0], sizes = [8, 14, 8], strides = [1, 1, 1]} : vector<8x16x8xf32> to vector<8x14x8xf32>
    %c1_62 = arith.constant 1 : index
    %c0_63 = arith.constant 0 : index
    %c0_64 = arith.constant 0 : index
    %c0_65 = arith.constant 0 : index
    %62 = vector.load %arg7[%c1_62, %c0_63, %c0_64, %c0_65] : memref<3x3x32x8xbf16, #tpu.memory_space<vmem>>, vector<1x1x32x8xbf16>
    %63 = vector.shape_cast %62 : vector<1x1x32x8xbf16> to vector<32x8xbf16>
    "tpu.trace_start"() <{level = 10 : i32, message = "ntd,df->ntf"}> : () -> ()
    %cst_66 = arith.constant dense<0.000000e+00> : vector<8x16x8xf32>
    %64 = tpu.matmul %2, %63, %cst_66 {dimension_numbers = #tpu.dot_dimension_numbers<[2], [0], [0, 1], [1], [0, 0, 0, 1, 1, 1], [], []>} : vector<8x16x32xbf16>, vector<32x8xbf16>, vector<8x16x8xf32> -> vector<8x16x8xf32>
    "tpu.trace_stop"() : () -> ()
    %c1_67 = arith.constant 1 : index
    %c1_68 = arith.constant 1 : index
    %c0_69 = arith.constant 0 : index
    %c0_70 = arith.constant 0 : index
    %65 = vector.load %arg7[%c1_67, %c1_68, %c0_69, %c0_70] : memref<3x3x32x8xbf16, #tpu.memory_space<vmem>>, vector<1x1x32x8xbf16>
    %66 = vector.shape_cast %65 : vector<1x1x32x8xbf16> to vector<32x8xbf16>
    "tpu.trace_start"() <{level = 10 : i32, message = "ntd,df->ntf"}> : () -> ()
    %cst_71 = arith.constant dense<0.000000e+00> : vector<8x16x8xf32>
    %67 = tpu.matmul %9, %66, %cst_71 {dimension_numbers = #tpu.dot_dimension_numbers<[2], [0], [0, 1], [1], [0, 0, 0, 1, 1, 1], [], []>} : vector<8x16x32xbf16>, vector<32x8xbf16>, vector<8x16x8xf32> -> vector<8x16x8xf32>
    "tpu.trace_stop"() : () -> ()
    %68 = arith.addf %64, %67 : vector<8x16x8xf32>
    %c1_72 = arith.constant 1 : index
    %c2_73 = arith.constant 2 : index
    %c0_74 = arith.constant 0 : index
    %c0_75 = arith.constant 0 : index
    %69 = vector.load %arg7[%c1_72, %c2_73, %c0_74, %c0_75] : memref<3x3x32x8xbf16, #tpu.memory_space<vmem>>, vector<1x1x32x8xbf16>
    %70 = vector.shape_cast %69 : vector<1x1x32x8xbf16> to vector<32x8xbf16>
    "tpu.trace_start"() <{level = 10 : i32, message = "ntd,df->ntf"}> : () -> ()
    %cst_76 = arith.constant dense<0.000000e+00> : vector<8x16x8xf32>
    %71 = tpu.matmul %16, %70, %cst_76 {dimension_numbers = #tpu.dot_dimension_numbers<[2], [0], [0, 1], [1], [0, 0, 0, 1, 1, 1], [], []>} : vector<8x16x32xbf16>, vector<32x8xbf16>, vector<8x16x8xf32> -> vector<8x16x8xf32>
    "tpu.trace_stop"() : () -> ()
    %72 = arith.addf %68, %71 : vector<8x16x8xf32>
    %73 = vector.extract_strided_slice %72 {offsets = [0, 1, 0], sizes = [8, 14, 8], strides = [1, 1, 1]} : vector<8x16x8xf32> to vector<8x14x8xf32>
    %74 = arith.addf %61, %73 : vector<8x14x8xf32>
    %c2_77 = arith.constant 2 : index
    %c0_78 = arith.constant 0 : index
    %c0_79 = arith.constant 0 : index
    %c0_80 = arith.constant 0 : index
    %75 = vector.load %arg7[%c2_77, %c0_78, %c0_79, %c0_80] : memref<3x3x32x8xbf16, #tpu.memory_space<vmem>>, vector<1x1x32x8xbf16>
    %76 = vector.shape_cast %75 : vector<1x1x32x8xbf16> to vector<32x8xbf16>
    "tpu.trace_start"() <{level = 10 : i32, message = "ntd,df->ntf"}> : () -> ()
    %cst_81 = arith.constant dense<0.000000e+00> : vector<8x16x8xf32>
    %77 = tpu.matmul %2, %76, %cst_81 {dimension_numbers = #tpu.dot_dimension_numbers<[2], [0], [0, 1], [1], [0, 0, 0, 1, 1, 1], [], []>} : vector<8x16x32xbf16>, vector<32x8xbf16>, vector<8x16x8xf32> -> vector<8x16x8xf32>
    "tpu.trace_stop"() : () -> ()
    %c2_82 = arith.constant 2 : index
    %c1_83 = arith.constant 1 : index
    %c0_84 = arith.constant 0 : index
    %c0_85 = arith.constant 0 : index
    %78 = vector.load %arg7[%c2_82, %c1_83, %c0_84, %c0_85] : memref<3x3x32x8xbf16, #tpu.memory_space<vmem>>, vector<1x1x32x8xbf16>
    %79 = vector.shape_cast %78 : vector<1x1x32x8xbf16> to vector<32x8xbf16>
    "tpu.trace_start"() <{level = 10 : i32, message = "ntd,df->ntf"}> : () -> ()
    %cst_86 = arith.constant dense<0.000000e+00> : vector<8x16x8xf32>
    %80 = tpu.matmul %9, %79, %cst_86 {dimension_numbers = #tpu.dot_dimension_numbers<[2], [0], [0, 1], [1], [0, 0, 0, 1, 1, 1], [], []>} : vector<8x16x32xbf16>, vector<32x8xbf16>, vector<8x16x8xf32> -> vector<8x16x8xf32>
    "tpu.trace_stop"() : () -> ()
    %81 = arith.addf %77, %80 : vector<8x16x8xf32>
    %c2_87 = arith.constant 2 : index
    %c2_88 = arith.constant 2 : index
    %c0_89 = arith.constant 0 : index
    %c0_90 = arith.constant 0 : index
    %82 = vector.load %arg7[%c2_87, %c2_88, %c0_89, %c0_90] : memref<3x3x32x8xbf16, #tpu.memory_space<vmem>>, vector<1x1x32x8xbf16>
    %83 = vector.shape_cast %82 : vector<1x1x32x8xbf16> to vector<32x8xbf16>
    "tpu.trace_start"() <{level = 10 : i32, message = "ntd,df->ntf"}> : () -> ()
    %cst_91 = arith.constant dense<0.000000e+00> : vector<8x16x8xf32>
    %84 = tpu.matmul %16, %83, %cst_91 {dimension_numbers = #tpu.dot_dimension_numbers<[2], [0], [0, 1], [1], [0, 0, 0, 1, 1, 1], [], []>} : vector<8x16x32xbf16>, vector<32x8xbf16>, vector<8x16x8xf32> -> vector<8x16x8xf32>
    "tpu.trace_stop"() : () -> ()
    %85 = arith.addf %81, %84 : vector<8x16x8xf32>
    %86 = vector.extract_strided_slice %85 {offsets = [0, 2, 0], sizes = [8, 14, 8], strides = [1, 1, 1]} : vector<8x16x8xf32> to vector<8x14x8xf32>
    %87 = arith.addf %74, %86 : vector<8x14x8xf32>
    %c0_92 = arith.constant 0 : index
    %c0_93 = arith.constant 0 : index
    %88 = vector.load %arg9[%c0_92, %c0_93] : memref<1x8xf32, #tpu.memory_space<vmem>>, vector<1x8xf32>
    %89 = vector.shape_cast %88 : vector<1x8xf32> to vector<1x1x8xf32>
    %90 = vector.broadcast %89 : vector<1x1x8xf32> to vector<8x14x8xf32>
    %91 = arith.addf %87, %90 : vector<8x14x8xf32>
    %cst_94 = arith.constant 0.000000e+00 : f32
    %92 = vector.broadcast %cst_94 : f32 to vector<8x14x8xf32>
    %93 = arith.maximumf %91, %92 : vector<8x14x8xf32>
    %cst_95 = arith.constant dense<0xFF800000> : vector<8x8xf32>
    %94 = vector.multi_reduction <maximumf>, %93, %cst_95 [1] : vector<8x14x8xf32> to vector<8x8xf32>
    %c0_96 = arith.constant 0 : index
    %c8 = arith.constant 8 : index
    %95 = vector.load %arg10[%c0_96, %c8] : memref<8x16xf32, #tpu.memory_space<vmem>>, vector<8x8xf32>
    tpu.vector_store %arg10[%c0_96, %c8], %94 {strides = array<i32>} : memref<8x16xf32, #tpu.memory_space<vmem>>, vector<8x8xf32>,
    return
  }
  func.func @transform_0(%arg0: i32) -> (i32, i32, i32) {
    %c0_i32 = arith.constant 0 : i32
    %c0_i32_0 = arith.constant 0 : i32
    %c0_i32_1 = arith.constant 0 : i32
    %c0_i32_2 = arith.constant 0 : i32
    return %c0_i32, %c0_i32_0, %c0_i32_1 : i32, i32, i32
  }
  func.func @transform_1(%arg0: i32) -> (i32, i32, i32) {
    %c0_i32 = arith.constant 0 : i32
    %c0_i32_0 = arith.constant 0 : i32
    %c0_i32_1 = arith.constant 0 : i32
    %c0_i32_2 = arith.constant 0 : i32
    return %c0_i32, %c0_i32_0, %c0_i32_1 : i32, i32, i32
  }
  func.func @transform_2(%arg0: i32) -> (i32, i32, i32) {
    %c0_i32 = arith.constant 0 : i32
    %c0_i32_0 = arith.constant 0 : i32
    %c0_i32_1 = arith.constant 0 : i32
    %c0_i32_2 = arith.constant 0 : i32
    return %c0_i32, %c0_i32_0, %c0_i32_1 : i32, i32, i32
  }
  func.func @transform_3(%arg0: i32) -> (i32, i32) {
    %c0_i32 = arith.constant 0 : i32
    %c0_i32_0 = arith.constant 0 : i32
    %c0_i32_1 = arith.constant 0 : i32
    return %c0_i32, %c0_i32_0 : i32, i32
  }
  func.func @transform_4(%arg0: i32) -> (i32, i32) {
    %c0_i32 = arith.constant 0 : i32
    %c0_i32_0 = arith.constant 0 : i32
    %c0_i32_1 = arith.constant 0 : i32
    return %c0_i32, %c0_i32_0 : i32, i32
  }
  func.func @transform_5(%arg0: i32) -> (i32, i32, i32, i32) {
    %c0_i32 = arith.constant 0 : i32
    %c0_i32_0 = arith.constant 0 : i32
    %c0_i32_1 = arith.constant 0 : i32
    %c0_i32_2 = arith.constant 0 : i32
    %c0_i32_3 = arith.constant 0 : i32
    return %c0_i32, %c0_i32_0, %c0_i32_1, %c0_i32_2 : i32, i32, i32, i32
  }
  func.func @transform_6(%arg0: i32) -> (i32, i32, i32, i32) {
    %c0_i32 = arith.constant 0 : i32
    %c0_i32_0 = arith.constant 0 : i32
    %c0_i32_1 = arith.constant 0 : i32
    %c0_i32_2 = arith.constant 0 : i32
    %c0_i32_3 = arith.constant 0 : i32
    return %c0_i32, %c0_i32_0, %c0_i32_1, %c0_i32_2 : i32, i32, i32, i32
  }
  func.func @transform_7(%arg0: i32) -> (i32, i32) {
    %c0_i32 = arith.constant 0 : i32
    %c0_i32_0 = arith.constant 0 : i32
    %c0_i32_1 = arith.constant 0 : i32
    return %c0_i32, %c0_i32_0 : i32, i32
  }
  func.func @transform_8(%arg0: i32) -> (i32, i32) {
    %c0_i32 = arith.constant 0 : i32
    %c0_i32_0 = arith.constant 0 : i32
    %c0_i32_1 = arith.constant 0 : i32
    return %c0_i32, %c0_i32_0 : i32, i32
  }
  func.func @transform_9(%arg0: i32) -> (i32, i32) {
    %c0_i32 = arith.constant 0 : i32
    %c0_i32_0 = arith.constant 0 : i32
    %c0_i32_1 = arith.constant 0 : i32
    return %c0_i32, %c0_i32_0 : i32, i32
  }
}

</mosaic_0001>

<bundles_post_ra>
// kernel: tpu_custom_call.1
= control target key start
LH: loop header
LB: loop body
LE: loop exit
PB: predicated region body
PF: predicated region fallthrough
CT: control target
= control target key end

     0   :  { %vm121_vm0 = vcmask 130048   ;;  %s4736_s0 = inlined_call_operand.vmem [shape: bf16[8,16,32], index: 0, kind: input, shape index: {}]   ;;  %s4737_s1 = inlined_call_operand.vmem [shape: bf16[8,16,16], index: 1, kind: input, shape index: {}]   ;;  %s4738_s2 = inlined_call_operand.vmem [shape: bf16[8,16,16], index: 2, kind: input, shape index: {}]   ;;  %s4739_s3 = inlined_call_operand.vmem [shape: bf16[16,32], index: 3, kind: input, shape index: {}]   ;;  %s4740_s4 = inlined_call_operand.vmem [shape: f32[1,32], index: 4, kind: input, shape index: {}]   ;;  %s4741_s5 = inlined_call_operand.vmem [shape: bf16[2,3,32,8], index: 5, kind: input, shape index: {}]   ;;  %s4742_s6 = inlined_call_operand.vmem [shape: bf16[3,3,32,8], index: 6, kind: input, shape index: {}]   ;;  %s4743_s7 = inlined_call_operand.vmem [shape: f32[1,8], index: 7, kind: input, shape index: {}]   ;;  %s4744_s8 = inlined_call_operand.vmem [shape: f32[1,8], index: 8, kind: input, shape index: {}]   ;;  %s4745_s9 = inlined_call_operand.hbm [shape: f32[8,16], index: 9, kind: output, shape index: {}]  }
   0x1   :  { %v3784_v0 = vld [vmem:[%s4739_s3] sm:$0xff]   ;;  %v3787_v3 = vld [vmem:[%s4737_s1 + $0x8] sm:$0xff]   ;;  %v3789_v5 = vld [vmem:[%s4737_s1 + $0x10] sm:$0xff]  }
   0x2   :  { %v3785_v1 = vld [vmem:[%s4737_s1] sm:$0xff]   ;;  %3284 = vmatprep.subr.bf16.mxu0 %v3784_v0  ;;  %3620 = vmatprep.subr.bf16.mxu1 %v3784_v0  ;;  %v3788_v4 = vld [vmem:[%s4737_s1 + $0x28] sm:$0xff]   ;;  %v3790_v6 = vld [vmem:[%s4737_s1 + $0x30] sm:$0xff]  }
   0x3   :  { %v3786_v2 = vld [vmem:[%s4737_s1 + $0x20] sm:$0xff]   ;;  %3285 = vmatpush3.bf16.msra.mxu0 %v3784_v0  ;;  %3621 = vmatpush3.bf16.msra.mxu1 %v3784_v0  ;;  %v3791_v7 = vld [vmem:[%s4737_s1 + $0x18] sm:$0xff]   ;;  %v3794_v10 = vld [vmem:[%s4738_s2 + $0x8] sm:$0xff]  }
   0x4   :  { %3286 = vmatprep.mubr.msk.bf16.mxu0 %vm121_vm0, %v3785_v1  ;;  %3294 = vmatprep.mubr.msk.bf16.mxu1 %vm121_vm0, %v3786_v2  ;;  %v3792_v8 = vld [vmem:[%s4737_s1 + $0x38] sm:$0xff]   ;;  %v3793_v9 = vld [vmem:[%s4738_s2] sm:$0xff]   ;;  %v3795_v11 = vld [vmem:[%s4738_s2 + $0x10] sm:$0xff]  }
   0x5   :  { %3302 = vmatprep.subr.bf16.mxu1 %v3784_v0  ;;  %v3801_v12 = vld [vmem:[%s4741_s5] sm:$0xff]   ;;  %v3802_v13 = vld [vmem:[%s4741_s5 + $0x8] sm:$0xff]   ;;  %v3796_v14 = vld [vmem:[%s4738_s2 + $0x18] sm:$0xff]  }
   0x6   :  { %3287 = vmatmul.mubr.msk.bf16.vlgmr.msra.gmra.mrb[0].mxu0 %vm121_vm0, %v3787_v3  ;;  %3295 = vmatmul.mubr.msk.bf16.vlgmr.msra.gmra.mrb[0].mxu1 %vm121_vm0, %v3788_v4  ;;  %v3797_v15 = vld [vmem:[%s4738_s2 + $0x20] sm:$0xff]   ;;  %v3798_v16 = vld [vmem:[%s4738_s2 + $0x28] sm:$0xff]   ;;  %v3799_v17 = vld [vmem:[%s4738_s2 + $0x30] sm:$0xff]  }
   0x7   :  { %3303 = vmatpush3.bf16.msra.mxu1 %v3784_v0  ;;  %3290 = vmatprep.mubr.msk.bf16.mxu0 %vm121_vm0, %v3789_v5  ;;  %v3800_v18 = vld [vmem:[%s4738_s2 + $0x38] sm:$0xff]  }
   0x8   :  { %3298 = vmatprep.mubr.msk.bf16.mxu1 %vm121_vm0, %v3790_v6  ;;  %3340 = vmatprep.subr.bf16.mxu0 %v3801_v12 }
   0x9   :  { %3341 = vmatpush3.bf16.msra.mxu0 %v3801_v12 }
   0xa   :  { %3342 = vmatprep.subr.bf16.mxu0 %v3802_v13 }
   0xd   :  { %3343 = vmatpush3.bf16.msra.mxu0 %v3802_v13 }
   0xe   :  { %3291 = vmatmul.mubr.msk.bf16.gmra.mrb[4].mxu0 %vm121_vm0, %v3791_v7  ;;  %3299 = vmatmul.mubr.msk.bf16.gmra.mrb[4].mxu1 %vm121_vm0, %v3792_v8 }
   0xf   :  { %3304 = vmatprep.mubr.msk.bf16.mxu1 %vm121_vm0, %v3793_v9 }
  0x16   :  { %3305 = vmatmul.mubr.msk.bf16.vlgmr.msra.gmra.mrb[8].mxu1 %vm121_vm0, %v3794_v10 }
  0x17   :  { %3308 = vmatprep.mubr.msk.bf16.mxu1 %vm121_vm0, %v3795_v11 }
  0x1e   :  { %3309 = vmatmul.mubr.msk.bf16.gmra.mrb[12].mxu1 %vm121_vm0, %v3796_v14 }
  0x1f   :  { %3312 = vmatprep.mubr.msk.bf16.mxu1 %vm121_vm0, %v3797_v15 }
  0x26   :  { %3313 = vmatmul.mubr.msk.bf16.gmra.mrb[16].mxu1 %vm121_vm0, %v3798_v16 }
  0x27   :  { %3316 = vmatprep.mubr.msk.bf16.mxu1 %vm121_vm0, %v3799_v17 }
  0x28   :  { %14 = vsyncpa [#allocation3], 0  ;;  %v4055_v19 = vld [vmem:[%s4736_s0] sm:$0xff]   ;;  %vm489_vm1 = vcmask 261120   ;;  %v4060_v20 = vld [vmem:[%s4736_s0 + $0x8] sm:$0xff]   ;;  %vm1312_vm2 = vcmask 1046528  }
  0x29   :  { %3344 = vmatprep.mubr.msk.bf16.mxu0 %vm489_vm1, %v4055_v19  ;;  %v3803_v21 = vld [vmem:[%s4741_s5 + $0x10] sm:$0xff]   ;;  %v4077_v23 = vld [vmem:[%s4736_s0 + $0x18] sm:$0xff]   ;;  %v3806_v24 = vld [vmem:[%s4741_s5 + $0x20] sm:$0xff]   ;;  %vm1410_vm3 = vcmask 63488   ;;  %vm1408_vm4 = vcmask 64512   ;;  %vm1490_vm5 = vcmask 1041409  }
  0x2a   :  { %3345 = vmatmul.mubr.msk.bf16.vlgmr.msra.gmra.mrb[8].mxu0 %vm489_vm1, %v4060_v20  ;;  %v4072_v22 = vld [vmem:[%s4736_s0 + $0x10] sm:$0xff]   ;;  %3320 = vmatprep.subr.bf16.mxu1 %v3803_v21  ;;  %v3809_v25 = vld [vmem:[%s4741_s5 + $0x18] sm:$0xff]   ;;  %v4092_v26 = vld [vmem:[%s4736_s0 + $0x20] sm:$0xff]   ;;  %vm1492_vm6 = vcmask 1042434   ;;  %vm1494_vm7 = vcmask 1043459   ;;  %vm1496_vm8 = vcmask 1044484  }
  0x2b   :  { %3348 = vmatprep.mubr.msk.bf16.mxu0 %vm489_vm1, %v4072_v22  ;;  %3321 = vmatpush3.bf16.msra.mxu1 %v3803_v21  ;;  %v4097_v27 = vld [vmem:[%s4736_s0 + $0x28] sm:$0xff]   ;;  %v4106_v28 = vld [vmem:[%s4736_s0 + $0x30] sm:$0xff]   ;;  %v4111_v29 = vld [vmem:[%s4736_s0 + $0x38] sm:$0xff]   ;;  %vm1498_vm9 = vcmask 1045509   ;;  %vm1500_vm10 = vcmask 1046534   ;;  %vm1502_vm11 = vcmask 1047559  }
  0x2c   :  { %3360 = vmatprep.subr.bf16.mxu0 %v3806_v24  ;;  %3322 = vmatprep.subr.bf16.mxu1 %v3809_v25  ;;  %v3812_v30 = vld [vmem:[%s4741_s5 + $0x28] sm:$0xff]   ;;  %v4123_v31 = vld [vmem:[%s4741_s5 + $0x40] sm:$0xff]   ;;  %v4129_v32 = vld [vmem:[%s4742_s6 + $0x10] sm:$0xff]   ;;  %vm2667_vm12 = vcmask 1045504   ;;  %vm2764_vm13 = vcmask 62464   ;;  %s3928_s22 = smov [#allocation2]  }
  0x2d   :  { %3361 = vmatpush3.bf16.msra.mxu0 %v3806_v24  ;;  %v4135_v33 = vld [vmem:[%s4740_s4] ss:$0 sm:$0xff]  ;;  %vm2854_vm14 = vcmask 130112  }
  0x2e   :  { %3317 = vmatmul.mubr.msk.bf16.gmra.mrb[20].mxu1 %vm121_vm0, %v3800_v18  ;;  %3362 = vmatprep.subr.bf16.mxu0 %v3812_v30 }
  0x2f   :  { %3323 = vmatpush3.bf16.msra.mxu1 %v3809_v25 }
  0x30   :  { %3380 = vmatprep.subr.bf16.mxu1 %v4123_v31 }
  0x31   :  { %3363 = vmatpush3.bf16.msra.mxu0 %v3812_v30 }
  0x32   :  { %3349 = vmatmul.mubr.msk.bf16.gmra.mrb[12].mxu0 %vm489_vm1, %v4077_v23  ;;  %3440 = vmatprep.subr.bf16.mxu0 %v4129_v32 }
  0x33   :  { %3352 = vmatprep.mubr.msk.bf16.mxu0 %vm489_vm1, %v4092_v26 }
  0x3a   :  { %3353 = vmatmul.mubr.msk.bf16.gmra.mrb[16].mxu0 %vm489_vm1, %v4097_v27 }
  0x3b   :  { %3356 = vmatprep.mubr.msk.bf16.mxu0 %vm489_vm1, %v4106_v28 }
  0x42   :  { %3357 = vmatmul.mubr.msk.bf16.gmra.mrb[20].mxu0 %vm489_vm1, %v4111_v29 }
  0xd9   :  { %v3288_v34 = vpop.f32.mrb[0].mxu0  ;;  %v3296_v35 = vpop.f32.mrb[0].mxu1 }
  0xda   :  { %v189_v36 = vadd.f32 %v3288_v34, %v4135_v33  ;;  %v221_v37 = vadd.f32 %v3296_v35, %v4135_v33  ;;  %v180_v38 = vpop.f32.mrb[1].mxu0  ;;  %v212_v39 = vpop.f32.mrb[1].mxu1  ;;  %v3817_v34 = vld [vmem:[%s4741_s5 + $0x48] sm:$0xff]  }
  0xdb   :  { %v181_v40 = vadd.f32 %v4135_v33, %v180_v38  ;;  %v213_v41 = vadd.f32 %v4135_v33, %v212_v39  ;;  %v3289_v42 = vpop.f32.mrb[2].mxu0  ;;  %v3297_v43 = vpop.f32.mrb[2].mxu1 }
  0xdc   :  { %3839 = vtanh.f32 %v189_v36  ;;  %v192_v44 = vadd.f32 %v3289_v42, %v4135_v33  ;;  %v183_v45 = vpop.f32.mrb[3].mxu0  ;;  %v215_v46 = vpop.f32.mrb[3].mxu1  ;;  %v224_v47 = vadd.f32 %v3297_v43, %v4135_v33  ;;  %v4177_v42 = vld [vmem:[%s4741_s5 + $0x30] sm:$0xff]  }
  0xdd   :  { %3841 = vtanh.f32 %v221_v37  ;;  %v184_v48 = vadd.f32 %v4135_v33, %v183_v45  ;;  %v216_v49 = vadd.f32 %v4135_v33, %v215_v46 }
  0xde   :  { %3843 = vtanh.f32 %v181_v40 }
  0xdf   :  { %3845 = vtanh.f32 %v213_v41 }
  0xe0   :  { %3847 = vtanh.f32 %v192_v44 }
  0xe1   :  { %3849 = vtanh.f32 %v224_v47  ;;  %v3292_v50 = vpop.f32.mrb[4].mxu0  ;;  %v3300_v51 = vpop.f32.mrb[4].mxu1 }
  0xe2   :  { %3851 = vtanh.f32 %v184_v48  ;;  %v205_v52 = vadd.f32 %v3292_v50, %v4135_v33  ;;  %v237_v53 = vadd.f32 %v3300_v51, %v4135_v33  ;;  %v196_v54 = vpop.f32.mrb[5].mxu0  ;;  %v228_v55 = vpop.f32.mrb[5].mxu1 }
  0xe3   :  { %3853 = vtanh.f32 %v216_v49  ;;  %v197_v56 = vadd.f32 %v4135_v33, %v196_v54  ;;  %v229_v57 = vadd.f32 %v4135_v33, %v228_v55  ;;  %v3293_v58 = vpop.f32.mrb[6].mxu0  ;;  %v3301_v59 = vpop.f32.mrb[6].mxu1 }
  0xe4   :  { %3855 = vtanh.f32 %v205_v52  ;;  %v208_v60 = vadd.f32 %v3293_v58, %v4135_v33  ;;  %v199_v61 = vpop.f32.mrb[7].mxu0  ;;  %v231_v62 = vpop.f32.mrb[7].mxu1  ;;  %v240_v63 = vadd.f32 %v3301_v59, %v4135_v33 }
  0xe5   :  { %3857 = vtanh.f32 %v237_v53  ;;  %v200_v1 = vadd.f32 %v4135_v33, %v199_v61  ;;  %v232_v3 = vadd.f32 %v4135_v33, %v231_v62 }
  0xe6   :  { %v3840_v0 = vpop.eup %3839  ;;  %3859 = vtanh.f32 %v197_v56 }
  0xe7   :  { %v3842_v2 = vpop.eup %3841  ;;  %3861 = vtanh.f32 %v229_v57 }
  0xe8   :  { %v3844_v4 = vpop.eup %3843  ;;  %3863 = vtanh.f32 %v208_v60 }
  0xe9   :  { %v3846_v5 = vpop.eup %3845  ;;  %3865 = vtanh.f32 %v240_v63  ;;  %v3306_v6 = vpop.f32.mrb[8].mxu1 }
  0xea   :  { %v3848_v7 = vpop.eup %3847  ;;  %3867 = vtanh.f32 %v200_v1  ;;  %v390_v8 = vadd.f32 %v3306_v6, %v4135_v33  ;;  %v381_v9 = vpop.f32.mrb[9].mxu1  ;;  %v3818_v1 = vld [vmem:[%s4742_s6 + $0x18] sm:$0xff]  }
  0xeb   :  { %v3850_v10 = vpop.eup %3849  ;;  %v4154_v11 = vpack.c.bf16 %v3848_v7, %v3840_v0  ;;  %3869 = vtanh.f32 %v232_v3  ;;  %v382_v12 = vadd.f32 %v4135_v33, %v381_v9  ;;  %v3307_v13 = vpop.f32.mrb[10].mxu1  ;;  %v3820_v7 = vld [vmem:[%s4742_s6] sm:$0xff]  }
  0xec   :  { %v3852_v14 = vpop.eup %3851  ;;  %3871 = vtanh.f32 %v390_v8  ;;  %v393_v15 = vadd.f32 %v3307_v13, %v4135_v33  ;;  %v384_v16 = vpop.f32.mrb[11].mxu1  ;;  %v4158_v17 = vpack.c.bf16 %v3850_v10, %v3842_v2 }
  0xed   :  { %v3854_v18 = vpop.eup %3853  ;;  %3873 = vtanh.f32 %v382_v12  ;;  %v385_v21 = vadd.f32 %v4135_v33, %v384_v16  ;;  %v4161_v24 = vpack.c.bf16 %v3852_v14, %v3844_v4 }
  0xee   :  { %v3856_v25 = vpop.eup %3855  ;;  %3875 = vtanh.f32 %v393_v15  ;;  %v4163_v30 = vpack.c.bf16 %v3854_v18, %v3846_v5 }
  0xef   :  { %v3858_v35 = vpop.eup %3857  ;;  %3877 = vtanh.f32 %v385_v21  ;;  %3324 = vmatprep.mubr.msk.bf16.mxu1 %vm489_vm1, %v4161_v24 }
  0xf0   :  { %v3860_v36 = vpop.eup %3859  ;;  %3325 = vmatmul.mubr.msk.bf16.vlgmr.msra.gmra.mrb[24].mxu1 %vm489_vm1, %v4154_v11 }
  0xf1   :  { %v3862_v37 = vpop.eup %3861  ;;  %v3310_v38 = vpop.f32.mrb[12].mxu1  ;;  %3381 = vmatpush3.bf16.msra.mxu1 %v4123_v31 }
  0xf2   :  { %v3864_v39 = vpop.eup %3863  ;;  %v406_v40 = vadd.f32 %v3310_v38, %v4135_v33  ;;  %v397_v41 = vpop.f32.mrb[13].mxu1  ;;  %3382 = vmatprep.subr.bf16.mxu1 %v3817_v34 }
  0xf3   :  { %v3866_v43 = vpop.eup %3865  ;;  %v398_v44 = vadd.f32 %v4135_v33, %v397_v41  ;;  %v3311_v45 = vpop.f32.mrb[14].mxu1  ;;  %v4180_v46 = vpack.c.bf16 %v3864_v39, %v3856_v25 }
  0xf4   :  { %v3868_v47 = vpop.eup %3867  ;;  %3879 = vtanh.f32 %v406_v40  ;;  %v409_v31 = vadd.f32 %v3311_v45, %v4135_v33  ;;  %v400_v48 = vpop.f32.mrb[15].mxu1  ;;  %v4183_v49 = vpack.c.bf16 %v3866_v43, %v3858_v35  ;;  %v3821_v40 = vld [vmem:[%s4741_s5 + $0x38] sm:$0xff]  }
  0xf5   :  { %v3870_v50 = vpop.eup %3869  ;;  %3881 = vtanh.f32 %v398_v44  ;;  %v401_v51 = vadd.f32 %v4135_v33, %v400_v48  ;;  %v4186_v52 = vpack.c.bf16 %v3868_v47, %v3860_v36  ;;  %3383 = vmatpush3.bf16.msra.mxu1 %v3817_v34  ;;  %v3824_v48 = vld [vmem:[%s4742_s6 + $0x20] sm:$0xff]  }
  0xf6   :  { %v3872_v53 = vpop.eup %3871  ;;  %3883 = vtanh.f32 %v409_v31  ;;  %v4188_v54 = vpack.c.bf16 %v3870_v50, %v3862_v37  ;;  %3400 = vmatprep.subr.bf16.mxu1 %v4177_v42  ;;  %v3823_v31 = vld [vmem:[%s4741_s5 + $0x50] sm:$0xff]   ;;  %v3825_v50 = vld [vmem:[%s4741_s5 + $0x58] sm:$0xff]   ;;  %s2862_s5 = sshll.u32 %s3928_s22, 4  ;;  %s2863_s5 = int_to_ptr.vmem [resolvable:$true] %s2862_s5 }
  0xf7   :  { %v3874_v55 = vpop.eup %3873  ;;  %3885 = vtanh.f32 %v401_v51  ;;  %3328 = vmatprep.mubr.msk.bf16.mxu1 %vm489_vm1, %v4186_v52  ;;  %v3827_v51 = vld [vmem:[%s4742_s6 + $0x40] sm:$0xff]   ;;  %s3903_s23 = scalar_lea.vmem %s2863_s5, 128  ;;  %p3908_p1 = scmp.lt.s32.totalorder %s2863_s5, %s2863_s5 }
  0xf8   :  { %v3876_v56 = vpop.eup %3875  ;;  %3329 = vmatmul.mubr.msk.bf16.gmra.mrb[28].mxu1 %vm489_vm1, %v4180_v46  ;;  %p3904_p0 = scmp.ne.s32.totalorder %s2863_s5, %s3903_s23  ;;  %p3909_p2 = scmp.lt.s32.totalorder %s3903_s23, %s3903_s23 }
  0xf9   :  { %v3878_v57 = vpop.eup %3877  ;;  %v4195_v58 = vpack.c.bf16 %v3876_v56, %v3872_v53  ;;  %3332 = vmatprep.mubr.msk.bf16.mxu1 %vm489_vm1, %v4163_v30  ;;  %v3314_v59 = vpop.f32.mrb[16].mxu1  ;;  %v3826_v53 = vld [vmem:[%s4742_s6 + $0x28] sm:$0xff]  }
  0xfa   :  { %v422_v60 = vadd.f32 %v3314_v59, %v4135_v33  ;;  %v413_v61 = vpop.f32.mrb[17].mxu1  ;;  %v4200_v62 = vpack.c.bf16 %v3878_v57, %v3874_v55  ;;  %v3828_v55 = vld [vmem:[%s4742_s6 + $0x70] sm:$0xff]   ;;  %v3829_v56 = vld [vmem:[%s4742_s6 + $0x48] sm:$0xff]   ;;  %v3830_v59 = vld [vmem:[%s4742_s6 + $0x78] sm:$0xff]   ;;  %p3910_p3 = por %p3909_p2, %p3908_p1 }
  0xfb   :  { %v414_v63 = vadd.f32 %v4135_v33, %v413_v61  ;;  %v3315_v0 = vpop.f32.mrb[18].mxu1  ;;  %v3831_v57 = vld [vmem:[%s4742_s6 + $0x30] sm:$0xff]   ;;  %v3833_v61 = vld [vmem:[%s4742_s6 + $0x38] sm:$0xff]  }
  0xfc   :  { %3887 = vtanh.f32 %v422_v60  ;;  %v425_v2 = vadd.f32 %v3315_v0, %v4135_v33  ;;  %v416_v3 = vpop.f32.mrb[19].mxu1  ;;  %3364 = vmatprep.mubr.msk.bf16.mxu0 %vm489_vm1, %v4200_v62  ;;  %v3832_v60 = vld [vmem:[%s4742_s6 + $0x60] sm:$0xff]   ;;  %v3834_v0 = vld [vmem:[%s4742_s6 + $0x68] sm:$0xff]   ;;  %p3911_p4 = pnand %p3910_p3, %p3904_p0 }
  0xfd   :  { %3889 = vtanh.f32 %v414_v63  ;;  %v417_v4 = vadd.f32 %v4135_v33, %v416_v3  ;;  %3365 = vmatmul.mubr.msk.bf16.vlgmr.msra.gmra.mrb[8].mxu0 %vm489_vm1, %v4195_v58  ;;  %v3835_v63 = vld [vmem:[%s4742_s6 + $0x50] sm:$0xff]  }
  0xfe   :  { %v3880_v5 = vpop.eup %3879  ;;  %3891 = vtanh.f32 %v425_v2  ;;  %3441 = vmatpush3.bf16.msra.mxu0 %v4129_v32 }
  0xff   :  { %v3882_v6 = vpop.eup %3881  ;;  %3893 = vtanh.f32 %v417_v4  ;;  %3442 = vmatprep.subr.bf16.mxu0 %v3818_v1 }
 0x100   :  { %v3884_v8 = vpop.eup %3883  ;;  %3333 = vmatmul.mubr.msk.bf16.gmra.mrb[32].mxu1 %vm489_vm1, %v4158_v17 }
 0x101   :  { %v3886_v9 = vpop.eup %3885  ;;  %3336 = vmatprep.mubr.msk.bf16.mxu1 %vm489_vm1, %v4188_v54  ;;  %v3318_v10 = vpop.f32.mrb[20].mxu1  ;;  %v4220_v12 = vpack.c.bf16 %v3884_v8, %v3880_v5 }
 0x102   :  { %v438_v32 = vadd.f32 %v3318_v10, %v4135_v33  ;;  %v429_v13 = vpop.f32.mrb[21].mxu1  ;;  %v4223_v14 = vpack.c.bf16 %v3886_v9, %v3882_v6  ;;  %3443 = vmatpush3.bf16.msra.mxu0 %v3818_v1 }
 0x103   :  { %v430_v15 = vadd.f32 %v4135_v33, %v429_v13  ;;  %v3319_v16 = vpop.f32.mrb[22].mxu1  ;;  %3460 = vmatprep.subr.bf16.mxu0 %v3820_v7 }
 0x104   :  { %3895 = vtanh.f32 %v438_v32  ;;  %v441_v18 = vadd.f32 %v3319_v16, %v4135_v33  ;;  %v432_v21 = vpop.f32.mrb[23].mxu1  ;;  %3368 = vmatprep.mubr.msk.bf16.mxu0 %vm489_vm1, %v4223_v14 }
 0x105   :  { %3897 = vtanh.f32 %v430_v15  ;;  %v433_v25 = vadd.f32 %v4135_v33, %v432_v21  ;;  %3369 = vmatmul.mubr.msk.bf16.gmra.mrb[12].mxu0 %vm489_vm1, %v4220_v12 }
 0x106   :  { %v3888_v34 = vpop.eup %3887  ;;  %3899 = vtanh.f32 %v441_v18 }
 0x107   :  { %v3890_v35 = vpop.eup %3889  ;;  %3901 = vtanh.f32 %v433_v25 }
 0x108   :  { %v3892_v36 = vpop.eup %3891  ;;  %3337 = vmatmul.mubr.msk.bf16.gmra.mrb[36].mxu1 %vm489_vm1, %v4183_v49 }
 0x109   :  { %v3894_v37 = vpop.eup %3893  ;;  %3384 = vmatprep.mubr.msk.bf16.mxu1 %vm489_vm1, %v4161_v24  ;;  %v4236_v38 = vpack.c.bf16 %v3892_v36, %v3888_v34 }
 0x10a   :  { %v4238_v39 = vpack.c.bf16 %v3894_v37, %v3890_v35 }
 0x10c   :  { %3372 = vmatprep.mubr.msk.bf16.mxu0 %vm489_vm1, %v4238_v39 }
 0x10d   :  { %3373 = vmatmul.mubr.msk.bf16.gmra.mrb[16].mxu0 %vm489_vm1, %v4236_v38 }
 0x10e   :  { %v3896_v33 = vpop.eup %3895 }
 0x10f   :  { %v3898_v41 = vpop.eup %3897 }
 0x110   :  { %v3900_v43 = vpop.eup %3899  ;;  %3385 = vmatmul.mubr.msk.bf16.vlgmr.msra.gmra.mrb[40].mxu1 %vm489_vm1, %v4154_v11 }
 0x111   :  { %v3902_v44 = vpop.eup %3901  ;;  %3388 = vmatprep.mubr.msk.bf16.mxu1 %vm489_vm1, %v4186_v52  ;;  %v4251_v45 = vpack.c.bf16 %v3900_v43, %v3896_v33  ;;  %3401 = vmatpush3.bf16.msra.mxu1 %v4177_v42  ;;  %v3822_v42 = vld [vmem:[%s4742_s6 + $0x8] sm:$0xff]  }
 0x112   :  { %v4254_v47 = vpack.c.bf16 %v3902_v44, %v3898_v41  ;;  %3402 = vmatprep.subr.bf16.mxu1 %v3821_v40 }
 0x114   :  { %3376 = vmatprep.mubr.msk.bf16.mxu0 %vm489_vm1, %v4254_v47 }
 0x115   :  { %3377 = vmatmul.mubr.msk.bf16.gmra.mrb[20].mxu0 %vm489_vm1, %v4251_v45  ;;  %3403 = vmatpush3.bf16.msra.mxu1 %v3821_v40 }
 0x116   :  { %3444 = vmatprep.mubr.msk.bf16.mxu0 %vm489_vm1, %v4161_v24  ;;  %3420 = vmatprep.subr.bf16.mxu1 %v3823_v31 }
 0x118   :  { %3389 = vmatmul.mubr.msk.bf16.gmra.mrb[44].mxu1 %vm489_vm1, %v4180_v46 }
 0x119   :  { %3392 = vmatprep.mubr.msk.bf16.mxu1 %vm489_vm1, %v4163_v30 }
 0x11d   :  { %3445 = vmatmul.mubr.msk.bf16.vlgmr.msra.gmra.mrb[24].mxu0 %vm489_vm1, %v4154_v11 }
 0x11e   :  { %3448 = vmatprep.mubr.msk.bf16.mxu0 %vm489_vm1, %v4186_v52  ;;  %3461 = vmatpush3.bf16.msra.mxu0 %v3820_v7 }
 0x11f   :  { %3462 = vmatprep.subr.bf16.mxu0 %v3822_v42 }
 0x120   :  { %3393 = vmatmul.mubr.msk.bf16.gmra.mrb[48].mxu1 %vm489_vm1, %v4158_v17 }
 0x121   :  { %3396 = vmatprep.mubr.msk.bf16.mxu1 %vm489_vm1, %v4188_v54 }
 0x122   :  { %3463 = vmatpush3.bf16.msra.mxu0 %v3822_v42 }
 0x123   :  { %3480 = vmatprep.subr.bf16.mxu0 %v3824_v48 }
 0x125   :  { %3449 = vmatmul.mubr.msk.bf16.gmra.mrb[28].mxu0 %vm489_vm1, %v4180_v46 }
 0x126   :  { %3452 = vmatprep.mubr.msk.bf16.mxu0 %vm489_vm1, %v4163_v30 }
 0x128   :  { %3397 = vmatmul.mubr.msk.bf16.gmra.mrb[52].mxu1 %vm489_vm1, %v4183_v49 }
 0x129   :  { %3404 = vmatprep.mubr.msk.bf16.mxu1 %vm489_vm1, %v4055_v19 }
 0x12d   :  { %3453 = vmatmul.mubr.msk.bf16.gmra.mrb[32].mxu0 %vm489_vm1, %v4158_v17 }
 0x12e   :  { %3456 = vmatprep.mubr.msk.bf16.mxu0 %vm489_vm1, %v4188_v54 }
 0x130   :  { %3405 = vmatmul.mubr.msk.bf16.vlgmr.msra.gmra.mrb[40].mxu1 %vm489_vm1, %v4060_v20 }
 0x131   :  { %3408 = vmatprep.mubr.msk.bf16.mxu1 %vm489_vm1, %v4072_v22  ;;  %3421 = vmatpush3.bf16.msra.mxu1 %v3823_v31 }
 0x132   :  { %3422 = vmatprep.subr.bf16.mxu1 %v3825_v50 }
 0x135   :  { %3457 = vmatmul.mubr.msk.bf16.gmra.mrb[36].mxu0 %vm489_vm1, %v4183_v49  ;;  %3423 = vmatpush3.bf16.msra.mxu1 %v3825_v50 }
 0x136   :  { %3464 = vmatprep.mubr.msk.bf16.mxu0 %vm489_vm1, %v4055_v19  ;;  %3500 = vmatprep.subr.bf16.mxu1 %v3827_v51 }
 0x138   :  { %3409 = vmatmul.mubr.msk.bf16.gmra.mrb[44].mxu1 %vm489_vm1, %v4077_v23 }
 0x139   :  { %3412 = vmatprep.mubr.msk.bf16.mxu1 %vm489_vm1, %v4092_v26 }
 0x13d   :  { %3465 = vmatmul.mubr.msk.bf16.vlgmr.msra.gmra.mrb[24].mxu0 %vm489_vm1, %v4060_v20 }
 0x13e   :  { %3481 = vmatpush3.bf16.msra.mxu0 %v3824_v48  ;;  %3468 = vmatprep.mubr.msk.bf16.mxu0 %vm489_vm1, %v4072_v22 }
 0x13f   :  { %3482 = vmatprep.subr.bf16.mxu0 %v3826_v53 }
 0x140   :  { %3413 = vmatmul.mubr.msk.bf16.gmra.mrb[48].mxu1 %vm489_vm1, %v4097_v27 }
 0x141   :  { %3416 = vmatprep.mubr.msk.bf16.mxu1 %vm489_vm1, %v4106_v28 }
 0x142   :  { %3483 = vmatpush3.bf16.msra.mxu0 %v3826_v53 }
 0x143   :  { %3560 = vmatprep.subr.bf16.mxu0 %v3828_v55 }
 0x145   :  { %3469 = vmatmul.mubr.msk.bf16.gmra.mrb[28].mxu0 %vm489_vm1, %v4077_v23 }
 0x146   :  { %3472 = vmatprep.mubr.msk.bf16.mxu0 %vm489_vm1, %v4092_v26 }
 0x148   :  { %3417 = vmatmul.mubr.msk.bf16.gmra.mrb[52].mxu1 %vm489_vm1, %v4111_v29 }
 0x149   :  { %3424 = vmatprep.mubr.msk.bf16.mxu1 %vm489_vm1, %v4200_v62 }
 0x14d   :  { %3473 = vmatmul.mubr.msk.bf16.gmra.mrb[32].mxu0 %vm489_vm1, %v4097_v27 }
 0x14e   :  { %3476 = vmatprep.mubr.msk.bf16.mxu0 %vm489_vm1, %v4106_v28 }
 0x150   :  { %3425 = vmatmul.mubr.msk.bf16.vlgmr.msra.gmra.mrb[40].mxu1 %vm489_vm1, %v4195_v58 }
 0x151   :  { %3428 = vmatprep.mubr.msk.bf16.mxu1 %vm489_vm1, %v4223_v14  ;;  %3501 = vmatpush3.bf16.msra.mxu1 %v3827_v51 }
 0x152   :  { %3502 = vmatprep.subr.bf16.mxu1 %v3829_v56 }
 0x155   :  { %3477 = vmatmul.mubr.msk.bf16.gmra.mrb[36].mxu0 %vm489_vm1, %v4111_v29  ;;  %3503 = vmatpush3.bf16.msra.mxu1 %v3829_v56 }
 0x156   :  { %3484 = vmatprep.mubr.msk.bf16.mxu0 %vm489_vm1, %v4200_v62  ;;  %3520 = vmatprep.subr.bf16.mxu1 %v3831_v57 }
 0x158   :  { %3429 = vmatmul.mubr.msk.bf16.gmra.mrb[44].mxu1 %vm489_vm1, %v4220_v12 }
 0x159   :  { %3432 = vmatprep.mubr.msk.bf16.mxu1 %vm489_vm1, %v4238_v39 }
 0x15d   :  { %3485 = vmatmul.mubr.msk.bf16.vlgmr.msra.gmra.mrb[24].mxu0 %vm489_vm1, %v4195_v58 }
 0x15e   :  { %3488 = vmatprep.mubr.msk.bf16.mxu0 %vm489_vm1, %v4223_v14  ;;  %3561 = vmatpush3.bf16.msra.mxu0 %v3828_v55 }
 0x15f   :  { %3562 = vmatprep.subr.bf16.mxu0 %v3830_v59 }
 0x160   :  { %3433 = vmatmul.mubr.msk.bf16.gmra.mrb[48].mxu1 %vm489_vm1, %v4236_v38 }
 0x161   :  { %3436 = vmatprep.mubr.msk.bf16.mxu1 %vm489_vm1, %v4254_v47 }
 0x162   :  { %3563 = vmatpush3.bf16.msra.mxu0 %v3830_v59 }
 0x163   :  { %3580 = vmatprep.subr.bf16.mxu0 %v3832_v60 }
 0x165   :  { %3489 = vmatmul.mubr.msk.bf16.gmra.mrb[28].mxu0 %vm489_vm1, %v4220_v12 }
 0x166   :  { %3492 = vmatprep.mubr.msk.bf16.mxu0 %vm489_vm1, %v4238_v39 }
 0x168   :  { %3437 = vmatmul.mubr.msk.bf16.gmra.mrb[52].mxu1 %vm489_vm1, %v4251_v45 }
 0x169   :  { %3504 = vmatprep.mubr.msk.bf16.mxu1 %vm489_vm1, %v4161_v24 }
 0x16d   :  { %3493 = vmatmul.mubr.msk.bf16.gmra.mrb[32].mxu0 %vm489_vm1, %v4236_v38 }
 0x16e   :  { %3496 = vmatprep.mubr.msk.bf16.mxu0 %vm489_vm1, %v4254_v47 }
 0x170   :  { %3505 = vmatmul.mubr.msk.bf16.vlgmr.msra.gmra.mrb[56].mxu1 %vm489_vm1, %v4154_v11 }
 0x171   :  { %3508 = vmatprep.mubr.msk.bf16.mxu1 %vm489_vm1, %v4186_v52  ;;  %3521 = vmatpush3.bf16.msra.mxu1 %v3831_v57  ;;  %v4524_v57 = vld [vmem:[%s4743_s7] ss:$0 sm:$0xff] }
 0x172   :  { %3522 = vmatprep.subr.bf16.mxu1 %v3833_v61 }
 0x175   :  { %3497 = vmatmul.mubr.msk.bf16.gmra.mrb[36].mxu0 %vm489_vm1, %v4251_v45  ;;  %3523 = vmatpush3.bf16.msra.mxu1 %v3833_v61 }
 0x176   :  { %3564 = vmatprep.mubr.msk.bf16.mxu0 %vm489_vm1, %v4161_v24  ;;  %3540 = vmatprep.subr.bf16.mxu1 %v3835_v63  ;;  %v3836_v24 = vld [vmem:[%s4742_s6 + $0x80] sm:$0xff]  }
 0x178   :  { %3509 = vmatmul.mubr.msk.bf16.gmra.mrb[60].mxu1 %vm489_vm1, %v4180_v46 }
 0x179   :  { %3512 = vmatprep.mubr.msk.bf16.mxu1 %vm489_vm1, %v4163_v30 }
 0x17d   :  { %3565 = vmatmul.mubr.msk.bf16.vlgmr.msra.gmra.mrb[40].mxu0 %vm489_vm1, %v4154_v11  ;;  %v3837_v11 = vld [vmem:[%s4742_s6 + $0x58] sm:$0xff]  }
 0x17e   :  { %3568 = vmatprep.mubr.msk.bf16.mxu0 %vm489_vm1, %v4186_v52  ;;  %3581 = vmatpush3.bf16.msra.mxu0 %v3832_v60 }
 0x17f   :  { %3582 = vmatprep.subr.bf16.mxu0 %v3834_v0 }
 0x180   :  { %3513 = vmatmul.mubr.msk.bf16.gmra.mrb[64].mxu1 %vm489_vm1, %v4158_v17 }
 0x181   :  { %3516 = vmatprep.mubr.msk.bf16.mxu1 %vm489_vm1, %v4188_v54 }
 0x182   :  { %3583 = vmatpush3.bf16.msra.mxu0 %v3834_v0 }
 0x183   :  { %3600 = vmatprep.subr.bf16.mxu0 %v3836_v24 }
 0x185   :  { %3569 = vmatmul.mubr.msk.bf16.gmra.mrb[44].mxu0 %vm489_vm1, %v4180_v46 }
 0x186   :  { %3572 = vmatprep.mubr.msk.bf16.mxu0 %vm489_vm1, %v4163_v30 }
 0x188   :  { %3517 = vmatmul.mubr.msk.bf16.gmra.mrb[68].mxu1 %vm489_vm1, %v4183_v49 }
 0x189   :  { %3524 = vmatprep.mubr.msk.bf16.mxu1 %vm489_vm1, %v4055_v19 }
 0x18d   :  { %3573 = vmatmul.mubr.msk.bf16.gmra.mrb[48].mxu0 %vm489_vm1, %v4158_v17  ;;  %v3838_v17 = vld [vmem:[%s4742_s6 + $0x88] sm:$0xff]  }
 0x18e   :  { %3576 = vmatprep.mubr.msk.bf16.mxu0 %vm489_vm1, %v4188_v54 }
 0x190   :  { %3525 = vmatmul.mubr.msk.bf16.vlgmr.msra.gmra.mrb[56].mxu1 %vm489_vm1, %v4060_v20 }
 0x191   :  { %3528 = vmatprep.mubr.msk.bf16.mxu1 %vm489_vm1, %v4072_v22  ;;  %3541 = vmatpush3.bf16.msra.mxu1 %v3835_v63 }
 0x192   :  { %3542 = vmatprep.subr.bf16.mxu1 %v3837_v11 }
 0x195   :  { %3577 = vmatmul.mubr.msk.bf16.gmra.mrb[52].mxu0 %vm489_vm1, %v4183_v49  ;;  %3543 = vmatpush3.bf16.msra.mxu1 %v3837_v11 }
 0x196   :  { %3584 = vmatprep.mubr.msk.bf16.mxu0 %vm489_vm1, %v4055_v19 }
 0x198   :  { %3529 = vmatmul.mubr.msk.bf16.gmra.mrb[60].mxu1 %vm489_vm1, %v4077_v23 }
 0x199   :  { %3532 = vmatprep.mubr.msk.bf16.mxu1 %vm489_vm1, %v4092_v26 }
 0x19d   :  { %3585 = vmatmul.mubr.msk.bf16.vlgmr.msra.gmra.mrb[40].mxu0 %vm489_vm1, %v4060_v20 }
 0x19e   :  { %3601 = vmatpush3.bf16.msra.mxu0 %v3836_v24  ;;  %3588 = vmatprep.mubr.msk.bf16.mxu0 %vm489_vm1, %v4072_v22 }
 0x19f   :  { %3602 = vmatprep.subr.bf16.mxu0 %v3838_v17 }
 0x1a0   :  { %3533 = vmatmul.mubr.msk.bf16.gmra.mrb[64].mxu1 %vm489_vm1, %v4097_v27 }
 0x1a1   :  { %3536 = vmatprep.mubr.msk.bf16.mxu1 %vm489_vm1, %v4106_v28 }
 0x1a2   :  { %3603 = vmatpush3.bf16.msra.mxu0 %v3838_v17 }
 0x1a5   :  { %3589 = vmatmul.mubr.msk.bf16.gmra.mrb[44].mxu0 %vm489_vm1, %v4077_v23 }
 0x1a6   :  { %3592 = vmatprep.mubr.msk.bf16.mxu0 %vm489_vm1, %v4092_v26 }
 0x1a8   :  { %3537 = vmatmul.mubr.msk.bf16.gmra.mrb[68].mxu1 %vm489_vm1, %v4111_v29 }
 0x1a9   :  { %3544 = vmatprep.mubr.msk.bf16.mxu1 %vm489_vm1, %v4200_v62 }
 0x1ad   :  { %3593 = vmatmul.mubr.msk.bf16.gmra.mrb[48].mxu0 %vm489_vm1, %v4097_v27 }
 0x1ae   :  { %3596 = vmatprep.mubr.msk.bf16.mxu0 %vm489_vm1, %v4106_v28 }
 0x1b0   :  { %3545 = vmatmul.mubr.msk.bf16.vlgmr.msra.gmra.mrb[56].mxu1 %vm489_vm1, %v4195_v58 }
 0x1b1   :  { %3548 = vmatprep.mubr.msk.bf16.mxu1 %vm489_vm1, %v4223_v14 }
 0x1b5   :  { %3597 = vmatmul.mubr.msk.bf16.gmra.mrb[52].mxu0 %vm489_vm1, %v4111_v29 }
 0x1b6   :  { %3604 = vmatprep.mubr.msk.bf16.mxu0 %vm489_vm1, %v4200_v62 }
 0x1b8   :  { %3549 = vmatmul.mubr.msk.bf16.gmra.mrb[60].mxu1 %vm489_vm1, %v4220_v12 }
 0x1b9   :  { %3552 = vmatprep.mubr.msk.bf16.mxu1 %vm489_vm1, %v4238_v39 }
 0x1bd   :  { %3605 = vmatmul.mubr.msk.bf16.vlgmr.msra.gmra.mrb[40].mxu0 %vm489_vm1, %v4195_v58 }
 0x1be   :  { %3608 = vmatprep.mubr.msk.bf16.mxu0 %vm489_vm1, %v4223_v14 }
 0x1c0   :  { %3553 = vmatmul.mubr.msk.bf16.gmra.mrb[64].mxu1 %vm489_vm1, %v4236_v38 }
 0x1c1   :  { %3556 = vmatprep.mubr.msk.bf16.mxu1 %vm489_vm1, %v4254_v47 }
 0x1c3   :  { %v3326_v19 = vpop.f32.mrb[24].mxu1 }
 0x1c4   :  { %v548_v20 = vpop.f32.mrb[25].mxu1 }
 0x1c5   :  { %3609 = vmatmul.mubr.msk.bf16.gmra.mrb[44].mxu0 %vm489_vm1, %v4220_v12  ;;  %v3327_v22 = vpop.f32.mrb[26].mxu1 }
 0x1c6   :  { %3612 = vmatprep.mubr.msk.bf16.mxu0 %vm489_vm1, %v4238_v39  ;;  %v551_v23 = vpop.f32.mrb[27].mxu1 }
 0x1c8   :  { %3557 = vmatmul.mubr.msk.bf16.gmra.mrb[68].mxu1 %vm489_vm1, %v4251_v45 }
 0x1cb   :  { %v3330_v26 = vpop.f32.mrb[28].mxu1 }
 0x1cc   :  { %v564_v27 = vpop.f32.mrb[29].mxu1 }
 0x1cd   :  { %3613 = vmatmul.mubr.msk.bf16.gmra.mrb[48].mxu0 %vm489_vm1, %v4236_v38  ;;  %v3331_v28 = vpop.f32.mrb[30].mxu1 }
 0x1ce   :  { %3616 = vmatprep.mubr.msk.bf16.mxu0 %vm489_vm1, %v4254_v47  ;;  %v567_v29 = vpop.f32.mrb[31].mxu1 }
 0x1d0   :  { %v3366_v30 = vpop.f32.mrb[8].mxu0 }
 0x1d1   :  { %v3622_v46 = vadd.f32 %v3366_v30, %v3326_v19  ;;  %v859_v49 = vpop.f32.mrb[9].mxu0 }
 0x1d2   :  { %v3623_v52 = vadd.f32 %v859_v49, %v548_v20  ;;  %v3367_v54 = vpop.f32.mrb[10].mxu0 }
 0x1d3   :  { %v3334_v58 = vpop.f32.mrb[32].mxu1  ;;  %v3624_v62 = vadd.f32 %v3367_v54, %v3327_v22  ;;  %v862_v1 = vpop.f32.mrb[11].mxu0 }
 0x1d4   :  { %v580_v2 = vpop.f32.mrb[33].mxu1  ;;  %v3625_v3 = vadd.f32 %v862_v1, %v551_v23 }
 0x1d5   :  { %v3335_v4 = vpop.f32.mrb[34].mxu1  ;;  %3617 = vmatmul.mubr.msk.bf16.gmra.mrb[52].mxu0 %vm489_vm1, %v4251_v45 }
 0x1d6   :  { %v583_v5 = vpop.f32.mrb[35].mxu1 }
 0x1d8   :  { %v3370_v6 = vpop.f32.mrb[12].mxu0 }
 0x1d9   :  { %v4497_v7 = vadd.f32 %v3370_v6, %v3330_v26  ;;  %v875_v8 = vpop.f32.mrb[13].mxu0 }
 0x1da   :  { %v4499_v9 = vadd.f32 %v875_v8, %v564_v27  ;;  %v3371_v10 = vpop.f32.mrb[14].mxu0 }
 0x1db   :  { %v3338_v12 = vpop.f32.mrb[36].mxu1  ;;  %v4501_v32 = vadd.f32 %v3371_v10, %v3331_v28  ;;  %v878_v13 = vpop.f32.mrb[15].mxu0 }
 0x1dc   :  { %v596_v14 = vpop.f32.mrb[37].mxu1  ;;  %v4503_v15 = vadd.f32 %v878_v13, %v567_v29 }
 0x1dd   :  { %v3339_v16 = vpop.f32.mrb[38].mxu1 }
 0x1de   :  { %v599_v18 = vpop.f32.mrb[39].mxu1 }
 0x1e0   :  { %v3374_v21 = vpop.f32.mrb[16].mxu0 }
 0x1e1   :  { %v4505_v25 = vadd.f32 %v3374_v21, %v3334_v58  ;;  %v891_v34 = vpop.f32.mrb[17].mxu0 }
 0x1e2   :  { %v4507_v35 = vadd.f32 %v891_v34, %v580_v2  ;;  %v3375_v36 = vpop.f32.mrb[18].mxu0 }
 0x1e3   :  { %v4509_v37 = vadd.f32 %v3375_v36, %v3335_v4  ;;  %v894_v38 = vpop.f32.mrb[19].mxu0 }
 0x1e4   :  { %v4511_v39 = vadd.f32 %v894_v38, %v583_v5 }
 0x1e8   :  { %v3378_v33 = vpop.f32.mrb[20].mxu0 }
 0x1e9   :  { %v4513_v40 = vadd.f32 %v3378_v33, %v3338_v12  ;;  %v907_v41 = vpop.f32.mrb[21].mxu0 }
 0x1ea   :  { %v4515_v43 = vadd.f32 %v907_v41, %v596_v14  ;;  %v3379_v44 = vpop.f32.mrb[22].mxu0 }
 0x1eb   :  { %v4517_v45 = vadd.f32 %v3379_v44, %v3339_v16  ;;  %v910_v47 = vpop.f32.mrb[23].mxu0 }
 0x1ec   :  { %v4519_v31 = vadd.f32 %v910_v47, %v599_v18 }
 0x223   :  { %v3426_v42 = vpop.f32.mrb[40].mxu1 }
 0x224   :  { %v1217_v48 = vpop.f32.mrb[41].mxu1  ;;  %v1316_v51 = vrot.slane %v3426_v42, 1 }
 0x225   :  { %v3427_v50 = vpop.f32.mrb[42].mxu1  ;;  %v1313_v56 = vrot.slane %v1217_v48, 1 }
 0x226   :  { %v1317_v53 = vrot.slane %v3427_v50, 1  ;;  %v1220_v55 = vpop.f32.mrb[43].mxu1 }
 0x227   :  { %v1314_v59 = vrot.slane %v1220_v55, 1 }
 0x228   :  { %v1318_v60 = vsel %vm1312_vm2, %v1316_v51, %v1317_v53  ;;  %v1356_v61 = vadd.f32 %v3624_v62, %v1317_v53 }
 0x229   :  { %v1355_v63 = vadd.f32 %v3622_v46, %v1318_v60  ;;  %v1315_v0 = vsel %vm1312_vm2, %v1313_v56, %v1314_v59  ;;  %v1354_v24 = vadd.f32 %v3625_v3, %v1314_v59 }
 0x22a   :  { %v1379_v11 = vadd.f32 %v4524_v57, %v1356_v61  ;;  %v1353_v17 = vadd.f32 %v3623_v52, %v1315_v0 }
 0x22b   :  { %v1378_v19 = vadd.f32 %v4524_v57, %v1355_v63  ;;  %v1377_v20 = vadd.f32 %v4524_v57, %v1354_v24  ;;  %v3430_v22 = vpop.f32.mrb[44].mxu1 }
 0x22c   :  { %v1395_v23 = vmax.f32 %v1379_v11, 0.0  ;;  %v1376_v26 = vadd.f32 %v4524_v57, %v1353_v17  ;;  %v1233_v27 = vpop.f32.mrb[45].mxu1  ;;  %v1322_v54 = vrot.slane %v3430_v22, 1 }
 0x22d   :  { %v1394_v28 = vmax.f32 %v1378_v19, 0.0  ;;  %v1393_v29 = vmax.f32 %v1377_v20, 0.0  ;;  %v3431_v30 = vpop.f32.mrb[46].mxu1  ;;  %v1319_v2 = vrot.slane %v1233_v27, 1 }
 0x22e   :  { %v1420_v46 = vsel %vm1410_vm3, %v1395_v23, -inf  ;;  %v1392_v49 = vmax.f32 %v1376_v26, 0.0  ;;  %v1323_v58 = vrot.slane %v3431_v30, 1  ;;  %v1236_v52 = vpop.f32.mrb[47].mxu1 }
 0x22f   :  { %v1419_v62 = vsel %vm1408_vm4, %v1394_v28, -inf  ;;  %v1411_v1 = vsel %vm1410_vm3, %v1393_v29, -inf  ;;  %v1320_v3 = vrot.slane %v1236_v52, 1 }
 0x230   :  { %v1421_v4 = vmax.f32 %v1419_v62, %v1420_v46  ;;  %v1409_v5 = vsel %vm1408_vm4, %v1392_v49, -inf  ;;  %v1324_v6 = vsel %vm1312_vm2, %v1322_v54, %v1323_v58  ;;  %v1360_v8 = vadd.f32 %v4501_v32, %v1323_v58  ;;  %v4538_v10 = vpop.f32.mrb[24].mxu0 }
 0x231   :  { %v1412_v12 = vmax.f32 %v1409_v5, %v1411_v1  ;;  %v1359_v13 = vadd.f32 %v4497_v7, %v1324_v6  ;;  %v1321_v14 = vsel %vm1312_vm2, %v1319_v2, %v1320_v3  ;;  %v1358_v16 = vadd.f32 %v4503_v15, %v1320_v3  ;;  %v4543_v18 = vpop.f32.mrb[25].mxu0 }
 0x232   :  { %v1422_v21 = vrot.slane %v1421_v4, 4  ;;  %v1383_v34 = vadd.f32 %v4524_v57, %v1360_v8  ;;  %v1357_v36 = vadd.f32 %v4499_v9, %v1321_v14  ;;  %v4547_v38 = vpop.f32.mrb[26].mxu0 }
 0x233   :  { %v1413_v33 = vrot.slane %v1412_v12, 4  ;;  %v1382_v32 = vadd.f32 %v4524_v57, %v1359_v13  ;;  %v1381_v41 = vadd.f32 %v4524_v57, %v1358_v16  ;;  %v3434_v44 = vpop.f32.mrb[48].mxu1  ;;  %v4551_v7 = vpop.f32.mrb[27].mxu0 }
 0x234   :  { %v1423_v47 = vmax.f32 %v1421_v4, %v1422_v21  ;;  %v1399_v42 = vmax.f32 %v1383_v34, 0.0  ;;  %v1380_v15 = vadd.f32 %v4524_v57, %v1357_v36  ;;  %v1328_v48 = vrot.slane %v3434_v44, 1  ;;  %v1249_v50 = vpop.f32.mrb[49].mxu1 }
 0x235   :  { %v1414_v51 = vmax.f32 %v1412_v12, %v1413_v33  ;;  %v1398_v53 = vmax.f32 %v1382_v32, 0.0  ;;  %v1397_v55 = vmax.f32 %v1381_v41, 0.0  ;;  %v1325_v9 = vrot.slane %v1249_v50, 1  ;;  %v3435_v56 = vpop.f32.mrb[50].mxu1 }
 0x236   :  { %v1424_v59 = vrot.slane %v1423_v47, 2  ;;  %v1438_v60 = vsel %vm1410_vm3, %v1399_v42, -inf  ;;  %v1396_v61 = vmax.f32 %v1380_v15, 0.0  ;;  %v1329_v63 = vrot.slane %v3435_v56, 1  ;;  %v1252_v0 = vpop.f32.mrb[51].mxu1 }
 0x237   :  { %v1415_v24 = vrot.slane %v1414_v51, 2  ;;  %v1437_v11 = vsel %vm1408_vm4, %v1398_v53, -inf  ;;  %v1429_v17 = vsel %vm1410_vm3, %v1397_v55, -inf  ;;  %v1326_v19 = vrot.slane %v1252_v0, 1 }
 0x238   :  { %v1425_v20 = vmax.f32 %v1423_v47, %v1424_v59  ;;  %v1439_v22 = vmax.f32 %v1437_v11, %v1438_v60  ;;  %v1428_v23 = vsel %vm1408_vm4, %v1396_v61, -inf  ;;  %v1330_v26 = vsel %vm1312_vm2, %v1328_v48, %v1329_v63  ;;  %v4559_v27 = vpop.f32.mrb[28].mxu0 }
 0x239   :  { %v1416_v28 = vmax.f32 %v1414_v51, %v1415_v24  ;;  %v1430_v29 = vmax.f32 %v1428_v23, %v1429_v17  ;;  %v1363_v30 = vadd.f32 %v4505_v25, %v1330_v26  ;;  %v1364_v46 = vadd.f32 %v4509_v37, %v1329_v63  ;;  %v4563_v49 = vpop.f32.mrb[29].mxu0 }
 0x23a   :  { %v1426_v54 = vrot.slane %v1425_v20, 1  ;;  %v1440_v58 = vrot.slane %v1439_v22, 4  ;;  %v1327_v52 = vsel %vm1312_vm2, %v1325_v9, %v1326_v19  ;;  %v1362_v62 = vadd.f32 %v4511_v39, %v1326_v19  ;;  %v4567_v1 = vpop.f32.mrb[30].mxu0 }
 0x23b   :  { %v1417_v2 = vrot.slane %v1416_v28, 1  ;;  %v1431_v3 = vrot.slane %v1430_v29, 4  ;;  %v1386_v4 = vadd.f32 %v4524_v57, %v1363_v30  ;;  %v1387_v5 = vadd.f32 %v4524_v57, %v1364_v46  ;;  %v3438_v6 = vpop.f32.mrb[52].mxu1  ;;  %v4571_v25 = vpop.f32.mrb[31].mxu0 }
 0x23c   :  { %v1427_v37 = vmax.f32 %v1425_v20, %v1426_v54  ;;  %v1441_v8 = vmax.f32 %v1439_v22, %v1440_v58  ;;  %v1361_v12 = vadd.f32 %v4507_v35, %v1327_v52  ;;  %v1385_v13 = vadd.f32 %v4524_v57, %v1362_v62  ;;  %v1265_v14 = vpop.f32.mrb[53].mxu1 }
 0x23d   :  { %v1418_v16 = vmax.f32 %v1416_v28, %v1417_v2  ;;  %v1432_v39 = vmax.f32 %v1430_v29, %v1431_v3  ;;  %v1402_v21 = vmax.f32 %v1386_v4, 0.0  ;;  %v1403_v34 = vmax.f32 %v1387_v5, 0.0  ;;  %v3439_v36 = vpop.f32.mrb[54].mxu1 }
 0x23e   :  { %v1442_v33 = vrot.slane %v1441_v8, 2  ;;  %v1384_v32 = vadd.f32 %v4524_v57, %v1361_v12  ;;  %v1401_v41 = vmax.f32 %v1385_v13, 0.0  ;;  %v1268_v44 = vpop.f32.mrb[55].mxu1  ;;  %v1334_v35 = vrot.slane %v3438_v6, 1 }
 0x23f   :  { %v1433_v47 = vrot.slane %v1432_v39, 2  ;;  %v1455_v42 = vsel %vm1408_vm4, %v1402_v21, -inf  ;;  %v1456_v15 = vsel %vm1410_vm3, %v1403_v34, -inf  ;;  %v1335_v56 = vrot.slane %v3439_v36, 1 }
 0x240   :  { %v1443_v48 = vmax.f32 %v1441_v8, %v1442_v33  ;;  %v1457_v50 = vmax.f32 %v1455_v42, %v1456_v15  ;;  %v1400_v51 = vmax.f32 %v1384_v32, 0.0  ;;  %v1447_v53 = vsel %vm1410_vm3, %v1401_v41, -inf  ;;  %v4579_v55 = vpop.f32.mrb[32].mxu0 }
 0x241   :  { %v1434_v9 = vmax.f32 %v1432_v39, %v1433_v47  ;;  %v1332_v59 = vrot.slane %v1268_v44, 1  ;;  %v4581_v60 = vpop.f32.mrb[33].mxu0  ;;  %v1491_v61 = vsel %vm1490_vm5, %v1427_v37, %v1418_v16  ;;  %v1331_v11 = vrot.slane %v1265_v14, 1 }
 0x242   :  { %v1444_v63 = vrot.slane %v1443_v48, 1  ;;  %v1458_v0 = vrot.slane %v1457_v50, 4  ;;  %v1446_v24 = vsel %vm1408_vm4, %v1400_v51, -inf  ;;  %v4585_v17 = vpop.f32.mrb[34].mxu0  ;;  %v1336_v22 = vsel %vm1312_vm2, %v1334_v35, %v1335_v56 }
 0x243   :  { %v1435_v19 = vrot.slane %v1434_v9, 1  ;;  %v1448_v20 = vmax.f32 %v1446_v24, %v1447_v53  ;;  %v1368_v23 = vadd.f32 %v4517_v45, %v1335_v56  ;;  %v4589_v26 = vpop.f32.mrb[35].mxu0  ;;  %v1367_v29 = vadd.f32 %v4513_v40, %v1336_v22 }
 0x244   :  { %v1459_v28 = vmax.f32 %v1457_v50, %v1458_v0  ;;  %v1333_v30 = vsel %vm1312_vm2, %v1331_v11, %v1332_v59  ;;  %v1445_v62 = vmax.f32 %v1443_v48, %v1444_v63  ;;  %v1366_v45 = vadd.f32 %v4519_v31, %v1332_v59 }
 0x245   :  { %v1436_v46 = vmax.f32 %v1434_v9, %v1435_v19  ;;  %v1449_v54 = vrot.slane %v1448_v20, 4  ;;  %v1391_v58 = vadd.f32 %v4524_v57, %v1368_v23  ;;  %v1365_v52 = vadd.f32 %v4515_v43, %v1333_v30 }
 0x246   :  { %v1460_v2 = vrot.slane %v1459_v28, 2  ;;  %v1390_v3 = vadd.f32 %v4524_v57, %v1367_v29  ;;  %v1389_v12 = vadd.f32 %v4524_v57, %v1366_v45 }
 0x247   :  { %v1450_v4 = vmax.f32 %v1448_v20, %v1449_v54  ;;  %v1407_v5 = vmax.f32 %v1391_v58, 0.0  ;;  %v1388_v6 = vadd.f32 %v4524_v57, %v1365_v52  ;;  %v1493_v40 = vsel %vm1492_vm6, %v1436_v46, %v1491_v61 }
 0x248   :  { %v1461_v37 = vmax.f32 %v1459_v28, %v1460_v2  ;;  %v1406_v8 = vmax.f32 %v1390_v3, 0.0  ;;  %v4600_v13 = vpop.f32.mrb[36].mxu0  ;;  %v1495_v43 = vsel %vm1494_vm7, %v1445_v62, %v1493_v40  ;;  %v1405_v34 = vmax.f32 %v1389_v12, 0.0 }
 0x249   :  { %v1451_v14 = vrot.slane %v1450_v4, 2  ;;  %v1474_v16 = vsel %vm1410_vm3, %v1407_v5, -inf  ;;  %v1404_v39 = vmax.f32 %v1388_v6, 0.0  ;;  %v4604_v21 = vpop.f32.mrb[37].mxu0 }
 0x24a   :  { %v1473_v31 = vsel %vm1408_vm4, %v1406_v8, -inf  ;;  %v4607_v36 = vpop.f32.mrb[38].mxu0  ;;  %v1462_v44 = vrot.slane %v1461_v37, 1  ;;  %v1465_v47 = vsel %vm1410_vm3, %v1405_v34, -inf }
 0x24b   :  { %v1452_v33 = vmax.f32 %v1450_v4, %v1451_v14  ;;  %v1475_v32 = vmax.f32 %v1473_v31, %v1474_v16  ;;  %v1464_v41 = vsel %vm1408_vm4, %v1404_v39, -inf  ;;  %v4610_v57 = vpop.f32.mrb[39].mxu0 }
 0x24c   :  { %v1466_v35 = vmax.f32 %v1464_v41, %v1465_v47  ;;  %v1463_v53 = vmax.f32 %v1461_v37, %v1462_v44 }
 0x24d   :  { %v1453_v42 = vrot.slane %v1452_v33, 1  ;;  %v1476_v15 = vrot.slane %v1475_v32, 4 }
 0x24e   :  { %v1467_v51 = vrot.slane %v1466_v35, 4 }
 0x24f   :  { %v1454_v48 = vmax.f32 %v1452_v33, %v1453_v42  ;;  %v1477_v50 = vmax.f32 %v1475_v32, %v1476_v15 }
 0x250   :  { %v1468_v56 = vmax.f32 %v1466_v35, %v1467_v51 }
 0x251   :  { %v1478_v9 = vrot.slane %v1477_v50, 2  ;;  %v1497_v59 = vsel %vm1496_vm8, %v1454_v48, %v1495_v43 }
 0x252   :  { %v1499_v61 = vsel %vm1498_vm9, %v1463_v53, %v1497_v59  ;;  %v1469_v63 = vrot.slane %v1468_v56, 2 }
 0x253   :  { %v1479_v0 = vmax.f32 %v1477_v50, %v1478_v9 }
 0x254   :  { %v1470_v24 = vmax.f32 %v1468_v56, %v1469_v63 }
 0x255   :  { %v1480_v11 = vrot.slane %v1479_v0, 1 }
 0x256   :  { %v1471_v19 = vrot.slane %v1470_v24, 1 }
 0x257   :  { %v1481_v22 = vmax.f32 %v1479_v0, %v1480_v11 }
 0x258   :  { %v1472_v20 = vmax.f32 %v1470_v24, %v1471_v19 }
 0x25a   :  { %v1501_v23 = vsel %vm1500_vm10, %v1472_v20, %v1499_v61 }
 0x25b   :  { %v1503_v28 = vsel %vm1502_vm11, %v1481_v22, %v1501_v23 }
 0x25c   :  { %1505 = vst.msk [vmem:[#allocation2] sm:$0xff] %vm1408_vm4, %v1503_v28 }
 0x283   :  { %v3546_v29 = vpop.f32.mrb[56].mxu1 }
 0x284   :  { %v2142_v30 = vpop.f32.mrb[57].mxu1  ;;  %v2240_v54 = vrot.slane %v3546_v29, 1 }
 0x285   :  { %v3547_v46 = vpop.f32.mrb[58].mxu1  ;;  %v2237_v62 = vrot.slane %v2142_v30, 1 }
 0x286   :  { %v2241_v58 = vrot.slane %v3547_v46, 1  ;;  %v2145_v52 = vpop.f32.mrb[59].mxu1 }
 0x287   :  { %v2238_v2 = vrot.slane %v2145_v52, 1 }
 0x288   :  { %v2242_v3 = vsel %vm1312_vm2, %v2240_v54, %v2241_v58  ;;  %v2280_v45 = vadd.f32 %v4547_v38, %v2241_v58 }
 0x289   :  { %v2279_v4 = vadd.f32 %v4538_v10, %v2242_v3  ;;  %v2239_v5 = vsel %vm1312_vm2, %v2237_v62, %v2238_v2  ;;  %v2278_v6 = vadd.f32 %v2238_v2, %v4551_v7 }
 0x28a   :  { %v2277_v40 = vadd.f32 %v2239_v5, %v4543_v18 }
 0x28b   :  { %v3550_v37 = vpop.f32.mrb[60].mxu1 }
 0x28c   :  { %v2158_v8 = vpop.f32.mrb[61].mxu1  ;;  %v2246_v43 = vrot.slane %v3550_v37, 1 }
 0x28d   :  { %v3551_v12 = vpop.f32.mrb[62].mxu1  ;;  %v2243_v39 = vrot.slane %v2158_v8, 1 }
 0x28e   :  { %v2247_v14 = vrot.slane %v3551_v12, 1  ;;  %v2161_v16 = vpop.f32.mrb[63].mxu1 }
 0x28f   :  { %v2244_v31 = vrot.slane %v2161_v16, 1 }
 0x290   :  { %v2248_v34 = vsel %vm1312_vm2, %v2246_v43, %v2247_v14  ;;  %v2284_v38 = vadd.f32 %v4567_v1, %v2247_v14  ;;  %v3606_v33 = vpop.f32.mrb[40].mxu0 }
 0x291   :  { %v2283_v10 = vadd.f32 %v4559_v27, %v2248_v34  ;;  %v2245_v32 = vsel %vm1312_vm2, %v2243_v39, %v2244_v31  ;;  %v4629_v7 = vadd.f32 %v2244_v31, %v4571_v25  ;;  %v2572_v18 = vpop.f32.mrb[41].mxu0  ;;  %v2671_v42 = vrot.slane %v3606_v33, 2  ;;  %v4637_v27 = vld [vmem:[%s4744_s8] ss:$0 sm:$0xff]  ;;  %s3927_s8 = smov 8  }
 0x292   :  { %v4632_v41 = vadd.f32 %v2245_v32, %v4563_v49  ;;  %v3607_v44 = vpop.f32.mrb[42].mxu0  ;;  %v2668_v1 = vrot.slane %v2572_v18, 2 }
 0x293   :  { %v3554_v47 = vpop.f32.mrb[64].mxu1  ;;  %v2672_v15 = vrot.slane %v3607_v44, 2  ;;  %v2575_v35 = vpop.f32.mrb[43].mxu0 }
 0x294   :  { %v2174_v48 = vpop.f32.mrb[65].mxu1  ;;  %v2669_v50 = vrot.slane %v2575_v35, 2  ;;  %v2252_v25 = vrot.slane %v3554_v47, 1 }
 0x295   :  { %v3555_v51 = vpop.f32.mrb[66].mxu1  ;;  %v2673_v53 = vsel %vm2667_vm12, %v2671_v42, %v2672_v15  ;;  %v2711_v49 = vadd.f32 %v2672_v15, %v2280_v45  ;;  %v2249_v0 = vrot.slane %v2174_v48, 1 }
 0x296   :  { %v2253_v9 = vrot.slane %v3555_v51, 1  ;;  %v2710_v56 = vadd.f32 %v2673_v53, %v2279_v4  ;;  %v2177_v59 = vpop.f32.mrb[67].mxu1  ;;  %v2670_v61 = vsel %vm2667_vm12, %v2668_v1, %v2669_v50  ;;  %v2709_v63 = vadd.f32 %v2669_v50, %v2278_v6 }
 0x297   :  { %v2734_v24 = vadd.f32 %v4637_v27, %v2711_v49  ;;  %v2250_v11 = vrot.slane %v2177_v59, 1  ;;  %v2708_v19 = vadd.f32 %v2670_v61, %v2277_v40 }
 0x298   :  { %v2254_v20 = vsel %vm1312_vm2, %v2252_v25, %v2253_v9  ;;  %v4644_v22 = vadd.f32 %v4585_v17, %v2253_v9  ;;  %v2733_v23 = vadd.f32 %v4637_v27, %v2710_v56  ;;  %v2732_v28 = vadd.f32 %v4637_v27, %v2709_v63  ;;  %v3610_v29 = vpop.f32.mrb[44].mxu0 }
 0x299   :  { %v4649_v30 = vadd.f32 %v4579_v55, %v2254_v20  ;;  %v2750_v46 = vmax.f32 %v2734_v24, 0.0  ;;  %v2251_v54 = vsel %vm1312_vm2, %v2249_v0, %v2250_v11  ;;  %v4653_v58 = vadd.f32 %v2250_v11, %v4589_v26  ;;  %v2588_v52 = vpop.f32.mrb[45].mxu0 }
 0x29a   :  { %v2749_v62 = vmax.f32 %v2733_v23, 0.0  ;;  %v4656_v2 = vadd.f32 %v2251_v54, %v4581_v60  ;;  %v2731_v17 = vadd.f32 %v4637_v27, %v2708_v19  ;;  %v2748_v3 = vmax.f32 %v2732_v28, 0.0  ;;  %v3611_v45 = vpop.f32.mrb[46].mxu0 }
 0x29b   :  { %v2774_v4 = vsel %vm2764_vm13, %v2750_v46, -inf  ;;  %v3558_v5 = vpop.f32.mrb[68].mxu1  ;;  %v2677_v55 = vrot.slane %v3610_v29, 2  ;;  %v2674_v6 = vrot.slane %v2588_v52, 2  ;;  %v2678_v40 = vrot.slane %v3611_v45, 2  ;;  %v2591_v37 = vpop.f32.mrb[47].mxu0 }
 0x29c   :  { %v2773_v8 = vsel %vm1408_vm4, %v2749_v62, -inf  ;;  %v2747_v26 = vmax.f32 %v2731_v17, 0.0  ;;  %v2765_v12 = vsel %vm2764_vm13, %v2748_v3, -inf  ;;  %v2258_v43 = vrot.slane %v3558_v5, 1  ;;  %v2190_v14 = vpop.f32.mrb[69].mxu1 }
 0x29d   :  { %v2775_v60 = vmax.f32 %v2773_v8, %v2774_v4  ;;  %v2255_v16 = vrot.slane %v2190_v14, 1  ;;  %v3559_v39 = vpop.f32.mrb[70].mxu1  ;;  %v2679_v31 = vsel %vm2667_vm12, %v2677_v55, %v2678_v40  ;;  %v2715_v34 = vadd.f32 %v2678_v40, %v2284_v38 }
 0x29e   :  { %v2763_v33 = vsel %vm1408_vm4, %v2747_v26, -inf  ;;  %v2259_v32 = vrot.slane %v3559_v39, 1  ;;  %v2714_v18 = vadd.f32 %v2679_v31, %v2283_v10  ;;  %v2193_v44 = vpop.f32.mrb[71].mxu1  ;;  %v2675_v47 = vrot.slane %v2591_v37, 2 }
 0x29f   :  { %v2776_v42 = vrot.slane %v2775_v60, 4  ;;  %v2766_v15 = vmax.f32 %v2763_v33, %v2765_v12  ;;  %v2738_v35 = vadd.f32 %v4637_v27, %v2715_v34  ;;  %v2256_v48 = vrot.slane %v2193_v44, 1 }
 0x2a0   :  { %v2260_v1 = vsel %vm1312_vm2, %v2258_v43, %v2259_v32  ;;  %v4667_v50 = vadd.f32 %v4607_v36, %v2259_v32  ;;  %v2737_v25 = vadd.f32 %v4637_v27, %v2714_v18  ;;  %v2676_v38 = vsel %vm2667_vm12, %v2674_v6, %v2675_v47  ;;  %v3614_v51 = vpop.f32.mrb[48].mxu0 }
 0x2a1   :  { %v2777_v53 = vmax.f32 %v2775_v60, %v2776_v42  ;;  %v2767_v49 = vrot.slane %v2766_v15, 4  ;;  %v4672_v10 = vadd.f32 %v4600_v13, %v2260_v1  ;;  %v2754_v9 = vmax.f32 %v2738_v35, 0.0  ;;  %v2604_v56 = vpop.f32.mrb[49].mxu0 }
 0x2a2   :  { %v2753_v59 = vmax.f32 %v2737_v25, 0.0  ;;  %v2257_v61 = vsel %vm1312_vm2, %v2255_v16, %v2256_v48  ;;  %v4676_v63 = vadd.f32 %v2256_v48, %v4610_v57  ;;  %v2712_v36 = vadd.f32 %v2676_v38, %v4632_v41  ;;  %v3615_v0 = vpop.f32.mrb[50].mxu0 }
 0x2a3   :  { %v2778_v24 = vrot.slane %v2777_v53, 2  ;;  %v2768_v11 = vmax.f32 %v2766_v15, %v2767_v49  ;;  %v2792_v19 = vsel %vm2764_vm13, %v2754_v9, -inf  ;;  %v4681_v20 = vadd.f32 %v2257_v61, %v4604_v21  ;;  %v2607_v13 = vpop.f32.mrb[51].mxu0 }
 0x2a4   :  { %v2791_v23 = vsel %vm1408_vm4, %v2753_v59, -inf  ;;  %v2713_v28 = vadd.f32 %v2675_v47, %v4629_v7  ;;  %v2735_v29 = vadd.f32 %v4637_v27, %v2712_v36  ;;  %v2683_v52 = vrot.slane %v3614_v51, 2 }
 0x2a5   :  { %v2779_v46 = vmax.f32 %v2777_v53, %v2778_v24  ;;  %v2769_v57 = vrot.slane %v2768_v11, 2  ;;  %v2793_v54 = vmax.f32 %v2791_v23, %v2792_v19  ;;  %v2684_v17 = vrot.slane %v3615_v0, 2 }
 0x2a6   :  { %v2736_v41 = vadd.f32 %v4637_v27, %v2713_v28  ;;  %v2751_v62 = vmax.f32 %v2735_v29, 0.0  ;;  %v2681_v3 = vrot.slane %v2607_v13, 2  ;;  %v2680_v5 = vrot.slane %v2604_v56, 2 }
 0x2a7   :  { %v2780_v45 = vrot.slane %v2779_v46, 1  ;;  %v2770_v4 = vmax.f32 %v2768_v11, %v2769_v57  ;;  %v2794_v21 = vrot.slane %v2793_v54, 4  ;;  %v2685_v7 = vsel %vm2667_vm12, %v2683_v52, %v2684_v17 }
 0x2a8   :  { %v2752_v55 = vmax.f32 %v2736_v41, 0.0  ;;  %v2782_v6 = vsel %vm1408_vm4, %v2751_v62, -inf  ;;  %v2719_v40 = vadd.f32 %v2684_v17, %v4644_v22  ;;  %v3618_v37 = vpop.f32.mrb[52].mxu0  ;;  %v2718_v43 = vadd.f32 %v2685_v7, %v4649_v30 }
 0x2a9   :  { %v2781_v8 = vmax.f32 %v2779_v46, %v2780_v45  ;;  %v2771_v26 = vrot.slane %v2770_v4, 1  ;;  %v2795_v12 = vmax.f32 %v2793_v54, %v2794_v21  ;;  %v2620_v14 = vpop.f32.mrb[53].mxu0  ;;  %v2682_v39 = vsel %vm2667_vm12, %v2680_v5, %v2681_v3 }
 0x2aa   :  { %v2783_v60 = vsel %vm2764_vm13, %v2752_v55, -inf  ;;  %v2742_v16 = vadd.f32 %v4637_v27, %v2719_v40  ;;  %v2717_v31 = vadd.f32 %v2681_v3, %v4653_v58  ;;  %v3619_v34 = vpop.f32.mrb[54].mxu0  ;;  %v2741_v22 = vadd.f32 %v4637_v27, %v2718_v43 }
 0x2ab   :  { %v2772_v33 = vmax.f32 %v2770_v4, %v2771_v26  ;;  %v2796_v32 = vrot.slane %v2795_v12, 2  ;;  %v2784_v18 = vmax.f32 %v2782_v6, %v2783_v60  ;;  %v2623_v44 = vpop.f32.mrb[55].mxu0  ;;  %v2716_v42 = vadd.f32 %v2682_v39, %v4656_v2 }
 0x2ac   :  { %v2758_v47 = vmax.f32 %v2742_v16, 0.0  ;;  %v2740_v30 = vadd.f32 %v4637_v27, %v2717_v31  ;;  %v2689_v15 = vrot.slane %v3618_v37, 2  ;;  %v2757_v1 = vmax.f32 %v2741_v22, 0.0 }
 0x2ad   :  { %v2797_v35 = vmax.f32 %v2795_v12, %v2796_v32  ;;  %v2785_v48 = vrot.slane %v2784_v18, 4  ;;  %v2686_v25 = vrot.slane %v2620_v14, 2  ;;  %v2739_v58 = vadd.f32 %v4637_v27, %v2716_v42 }
 0x2ae   :  { %v2810_v38 = vsel %vm2764_vm13, %v2758_v47, -inf  ;;  %v2756_v51 = vmax.f32 %v2740_v30, 0.0  ;;  %v2690_v53 = vrot.slane %v3619_v34, 2  ;;  %v2809_v56 = vsel %vm1408_vm4, %v2757_v1, -inf }
 0x2af   :  { %v2798_v49 = vrot.slane %v2797_v35, 1  ;;  %v2786_v9 = vmax.f32 %v2784_v18, %v2785_v48  ;;  %v2687_v59 = vrot.slane %v2623_v44, 2  ;;  %v2811_v61 = vmax.f32 %v2809_v56, %v2810_v38 }
 0x2b0   :  { %v2755_v2 = vmax.f32 %v2739_v58, 0.0  ;;  %v2801_v36 = vsel %vm2764_vm13, %v2756_v51, -inf  ;;  %v2691_v0 = vsel %vm2667_vm12, %v2689_v15, %v2690_v53  ;;  %v2723_v19 = vadd.f32 %v2690_v53, %v4667_v50 }
 0x2b1   :  { %v2787_v24 = vrot.slane %v2786_v9, 2  ;;  %v2722_v11 = vadd.f32 %v2691_v0, %v4672_v10  ;;  %v2688_v13 = vsel %vm2667_vm12, %v2686_v25, %v2687_v59  ;;  %v2812_v23 = vrot.slane %v2811_v61, 4 }
 0x2b2   :  { %v2800_v28 = vsel %vm1408_vm4, %v2755_v2, -inf  ;;  %v2720_v29 = vadd.f32 %v2688_v13, %v4681_v20  ;;  %v2721_v46 = vadd.f32 %v2687_v59, %v4676_v63  ;;  %v2746_v41 = vadd.f32 %v4637_v27, %v2723_v19 }
 0x2b3   :  { %v2788_v57 = vmax.f32 %v2786_v9, %v2787_v24  ;;  %v2802_v54 = vmax.f32 %v2800_v28, %v2801_v36  ;;  %v2745_v52 = vadd.f32 %v4637_v27, %v2722_v11  ;;  %v2813_v62 = vmax.f32 %v2811_v61, %v2812_v23 }
 0x2b4   :  { %v2743_v10 = vadd.f32 %v4637_v27, %v2720_v29  ;;  %v2744_v50 = vadd.f32 %v4637_v27, %v2721_v46  ;;  %v2799_v17 = vmax.f32 %v2797_v35, %v2798_v49  ;;  %v2762_v21 = vmax.f32 %v2746_v41, 0.0 }
 0x2b5   :  { %v2789_v3 = vrot.slane %v2788_v57, 1  ;;  %v2803_v45 = vrot.slane %v2802_v54, 4  ;;  %v2761_v4 = vmax.f32 %v2745_v52, 0.0  ;;  %v2814_v5 = vrot.slane %v2813_v62, 2 }
 0x2b6   :  { %v2759_v20 = vmax.f32 %v2743_v10, 0.0  ;;  %v2760_v55 = vmax.f32 %v2744_v50, 0.0  ;;  %v2844_v63 = vsel %vm1490_vm5, %v2781_v8, %v2772_v33  ;;  %v2828_v37 = vsel %vm2764_vm13, %v2762_v21, -inf }
 0x2b7   :  { %v2790_v6 = vmax.f32 %v2788_v57, %v2789_v3  ;;  %v2804_v7 = vmax.f32 %v2802_v54, %v2803_v45  ;;  %v2827_v40 = vsel %vm1408_vm4, %v2761_v4, -inf  ;;  %v2815_v43 = vmax.f32 %v2813_v62, %v2814_v5 }
 0x2b8   :  { %v2829_v26 = vmax.f32 %v2827_v40, %v2828_v37  ;;  %v2818_v12 = vsel %vm1408_vm4, %v2759_v20, -inf  ;;  %v2819_v27 = vsel %vm2764_vm13, %v2760_v55, -inf }
 0x2b9   :  { %v2805_v14 = vrot.slane %v2804_v7, 2  ;;  %v2820_v60 = vmax.f32 %v2818_v12, %v2819_v27  ;;  %v2845_v16 = vsel %vm1492_vm6, %v2790_v6, %v2844_v63  ;;  %v2816_v33 = vrot.slane %v2815_v43, 1 }
 0x2ba   :  { %v2830_v39 = vrot.slane %v2829_v26, 4  ;;  %v2846_v31 = vsel %vm1494_vm7, %v2799_v17, %v2845_v16 }
 0x2bb   :  { %v2806_v8 = vmax.f32 %v2804_v7, %v2805_v14  ;;  %v2821_v34 = vrot.slane %v2820_v60, 4  ;;  %v2817_v30 = vmax.f32 %v2815_v43, %v2816_v33 }
 0x2bc   :  { %v2831_v32 = vmax.f32 %v2829_v26, %v2830_v39 }
 0x2bd   :  { %v2822_v18 = vmax.f32 %v2820_v60, %v2821_v34  ;;  %v2807_v22 = vrot.slane %v2806_v8, 1 }
 0x2be   :  { %v2832_v44 = vrot.slane %v2831_v32, 2 }
 0x2bf   :  { %v2808_v47 = vmax.f32 %v2806_v8, %v2807_v22  ;;  %v2823_v42 = vrot.slane %v2822_v18, 2 }
 0x2c0   :  { %v2833_v15 = vmax.f32 %v2831_v32, %v2832_v44 }
 0x2c1   :  { %v2824_v35 = vmax.f32 %v2822_v18, %v2823_v42  ;;  %v2847_v48 = vsel %vm1496_vm8, %v2808_v47, %v2846_v31 }
 0x2c2   :  { %v2834_v1 = vrot.slane %v2833_v15, 1  ;;  %v2848_v25 = vsel %vm1498_vm9, %v2817_v30, %v2847_v48 }
 0x2c3   :  { %v2825_v38 = vrot.slane %v2824_v35, 1 }
 0x2c4   :  { %v2835_v51 = vmax.f32 %v2833_v15, %v2834_v1 }
 0x2c5   :  { %v2826_v58 = vmax.f32 %v2824_v35, %v2825_v38 }
 0x2c7   :  { %v2849_v53 = vsel %vm1500_vm10, %v2826_v58, %v2848_v25 }
 0x2c8   :  { %v2850_v49 = vsel %vm1502_vm11, %v2835_v51, %v2849_v53 }
 0x2c9   :  { %2851 = vrot.lane.b32.xlu0 %v2850_v49, %s3927_s8 }
 0x33b   :  { %v2852_v9 = vpop.permute.xlu0 %2851 }
 0x33c   :  { %2855 = vst.msk [vmem:[#allocation2] sm:$0xff] %vm2854_vm14, %v2852_v9 }
 0x33d   :  { %3914 = shalt.err (!%p3911_p4)
}
 0x33e   :  { %s3915_s25 = scalar_lea.hbm %s4745_s9, 128 }
 0x33f   :  { %p3916_p5 = scmp.ne.s32.totalorder %s4745_s9, %s3915_s25  ;;  %p3919_p6 = scmp.lt.u32.totalorder %s3915_s25, %s4745_s9 }
 0x341   :  { %p3921_p7 = pnand %p3919_p6, %p3916_p5 }
 0x343   :  { %3924 = shalt.err (!%p3921_p7)
}
 0x344   :  { %2865 = dma.vmem_to_hbm [thread:$0]  %s2863_s5, 128, %s4745_s9, [#allocation3]  }
 0x345   :  { %3925 = dma.done.wait [#allocation3], 128  }
 0x346   :  { %3926 = vsyncadd [#allocation3], 4294967168 }
 0x347   :  { %2869 = vsyncpa [#allocation3], 1 }

</bundles_post_ra>
